<compile_context>
chip_gen: v7x
topology: tpu7x:2x2x1
jax: 0.10.0
libtpu: 0.0.40
codegen_flags: <defaults>
</compile_context>

<pallas_src>
import functools

import jax
import jax.numpy as jnp
import numpy as np
from jax import lax
from jax.experimental import pallas as pl
from jax.experimental.pallas import tpu as pltpu


def _round_up(x, m):
    return (x + m - 1) // m * m


# ----------------------------------------------------------------------------
# Pallas kernel: one output time-tile of the full WaveNet forward
# ----------------------------------------------------------------------------
def _wavenet_kernel(nLayers, nStacks, numOutputLayers, R, S,
                    tile_out, halo_pad, t_blk,
                    x_ref, w0_ref, b0_ref, wbig_ref, bbig_ref,
                    wrs_ref, brs_ref, alpha_ref, *rest):
    head_refs = rest[:-1]            # [w_out0, b_out0, w_out1, b_out1, ...]
    out_ref = rest[-1]

    # Input window for this output tile: tile_out samples + halo_pad left ctx.
    start = pl.multiple_of(pl.program_id(0) * tile_out, 128)
    xw = x_ref[:, pl.ds(start, t_blk)]                     # (1, t_blk) f32

    # conv0 (1x1, 1 -> R channels): broadcast multiply-add on the VPU.
    h = w0_ref[...] * xw + b0_ref[...]                     # (R, t_blk) f32

    skip = None
    for i in range(nLayers * nStacks):                     # static unroll
        d = 2 ** (i % nLayers)
        # Right-aligned frame: output position p pairs h[p-d] (left tap) with
        # h[p] (right tap).  roll goes to the XLU and keeps shapes fixed; the
        # wrapped prefix only touches positions outside the receptive field.
        h_prev = pltpu.roll(h, d, axis=1)                  # h_prev[:,p]=h[:,p-d]
        x_big = jnp.concatenate([h_prev, h], axis=0)       # (2R, t_blk)

        # Fused filter+gate taps: one (2R,2R) x (2R,t_blk) matmul per layer.
        w_big = wbig_ref[i]                                # per-layer view only
        pre = jnp.dot(w_big, x_big.astype(w_big.dtype),
                      preferred_element_type=jnp.float32) + bbig_ref[i]
        pre_f, pre_g = pre[:R], pre[R:]
        # sigmoid(x) = 0.5*tanh(0.5*x) + 0.5  (single EUP tanh, no exp+divide)
        z = jnp.tanh(pre_f) * (0.5 * jnp.tanh(0.5 * pre_g) + 0.5)

        # Fused residual + skip 1x1 convs: one (R+S,R) x (R,t_blk) matmul.
        w_rs = wrs_ref[i]
        rs = jnp.dot(w_rs, z.astype(w_rs.dtype),
                     preferred_element_type=jnp.float32) + brs_ref[i]
        h = rs[:R] + h                                     # residual, fixed length
        skip = rs[R:] if skip is None else skip + rs[R:]   # skip accumulation

    # Only the last tile_out positions of the window are valid final outputs.
    # halo_pad is a multiple of 128, so this slice is lane-aligned.
    out = skip[:, halo_pad:]                               # (S, tile_out)
    for o in range(numOutputLayers):
        a = alpha_ref[o]                                   # per-channel PReLU
        out = jnp.where(out >= 0.0, out, a * out)
        w = head_refs[2 * o][...]
        b = head_refs[2 * o + 1][...]
        out = jnp.dot(w, out.astype(w.dtype),
                      preferred_element_type=jnp.float32) + b
    out_ref[...] = out.astype(out_ref.dtype)               # lane-dense store


# ----------------------------------------------------------------------------
# Wrapper: padding, weight packing/fusion, grid + BlockSpecs
# ----------------------------------------------------------------------------
def wavenet_forward(x, params, cfg, *, tile_out=128, weight_dtype=jnp.bfloat16):
    """Runs WaveNet forward; returns (1, nChannels, L_out) like the nn.Module."""
    nLayers, nStacks, numOutputLayers, nChannels = cfg
    R = params['w0'].shape[0]                  # residual channels
    S = params['wskip'].shape[1]               # skip channels
    B = nLayers * nStacks
    T = int(x.shape[0])
    assert tile_out % 128 == 0

    halo = 2 ** nLayers * nStacks - 1          # left context per output sample
    L_out = T - halo                           # == T - 2**nLayers*nStacks + 1
    assert L_out >= 1, "input too short for this receptive field"

    halo_pad = _round_up(halo, 128)            # lane-aligned halo
    t_blk = tile_out + halo_pad                # per-tile window length
    L_out_pad = _round_up(L_out, tile_out)
    num_tiles = L_out_pad // tile_out
    T_total = L_out_pad + halo_pad
    left_pad = halo_pad - halo

    x_pad = jnp.zeros((1, T_total), jnp.float32)
    x_pad = x_pad.at[0, left_pad:left_pad + T].set(x.astype(jnp.float32))

    # ---- wrapper-side weight packing (layout plumbing only) ----
    wf, wg = params['wf'], params['wg']                                # (B,2,R,R)
    w_big = jnp.concatenate(
        [jnp.concatenate([wf[:, 0], wf[:, 1]], axis=-1),
         jnp.concatenate([wg[:, 0], wg[:, 1]], axis=-1)], axis=1)      # (B,2R,2R)
    b_big = jnp.concatenate([params['bf'], params['bg']], axis=1)      # (B,2R,1)
    w_rs = jnp.concatenate([params['wres'], params['wskip']], axis=1)  # (B,R+S,R)
    b_rs = jnp.concatenate([params['bres'], params['bskip']], axis=1)  # (B,R+S,1)

    C_pad = _round_up(max(nChannels, 8), 8)    # sublane-padded output channels
    head_args = []
    for o, (w, b) in enumerate(params['out_layers']):
        if o == numOutputLayers - 1:           # pad final 1x1 conv to C_pad rows
            w = jnp.zeros((C_pad, w.shape[1]), w.dtype).at[:nChannels].set(w)
            b = jnp.zeros((C_pad, 1), b.dtype).at[:nChannels].set(b)
        head_args += [w.astype(weight_dtype), b.astype(jnp.float32)]

    args = [x_pad,
            params['w0'].astype(jnp.float32), params['b0'].astype(jnp.float32),
            w_big.astype(weight_dtype), b_big.astype(jnp.float32),
            w_rs.astype(weight_dtype), b_rs.astype(jnp.float32),
            params['alpha'].astype(jnp.float32)] + head_args

    def resident(a):                           # whole array, stays in VMEM
        return pl.BlockSpec(a.shape, lambda j, _z=(0,) * a.ndim: _z)

    in_specs = [resident(a) for a in args]
    out_specs = pl.BlockSpec((C_pad, tile_out), lambda j: (0, j))

    # Advisory cost estimate for XLA scheduling around the custom call.
    head_flops = sum(2 * w.shape[0] * w.shape[1] * tile_out
                     for (w, _) in params['out_layers'])
    flops = num_tiles * (2 * R * t_blk
                         + B * (2 * (2 * R) * (2 * R) * t_blk
                                + 2 * (R + S) * R * t_blk)
                         + head_flops)
    trans = num_tiles * B * 2 * R * t_blk
    bytes_accessed = int(sum(a.size * a.dtype.itemsize for a in args)
                         + C_pad * L_out_pad * 4)

    kernel = functools.partial(_wavenet_kernel, nLayers, nStacks,
                               numOutputLayers, R, S, tile_out, halo_pad, t_blk)
    out = pl.pallas_call(
        kernel,
        out_shape=jax.ShapeDtypeStruct((C_pad, L_out_pad), jnp.float32),
        grid_spec=pltpu.PrefetchScalarGridSpec(
            num_scalar_prefetch=0,
            grid=(num_tiles,),
            in_specs=in_specs,
            out_specs=out_specs),
        compiler_params=pltpu.CompilerParams(
            dimension_semantics=("parallel",),     # megacore-shard time tiles
            vmem_limit_bytes=32 * 1024 * 1024),
        cost_estimate=pl.CostEstimate(flops=int(flops),
                                      transcendentals=int(trans),
                                      bytes_accessed=bytes_accessed),
    )(*args)
    return out[:nChannels, :L_out][None]       # (1, nChannels, L_out)


# ----------------------------------------------------------------------------
# Deterministic synthetic parameters (same tensor shapes as the nn.Module)
# ----------------------------------------------------------------------------
def init_params(key, nLayers, nStacks, nChannels, nResChannels, nSkipChannels,
                numOutputLayers):
    B = nLayers * nStacks
    R, S = nResChannels, nSkipChannels
    keys = jax.random.split(key, 12)

    def rnd(k, shape):
        return jax.random.normal(k, shape, jnp.float32) * 0.1

    params = dict(
        w0=rnd(keys[0], (R, 1)),            # Conv1d(1, R, k=1) weight
        b0=rnd(keys[1], (R, 1)),
        wf=rnd(keys[2], (B, 2, R, R)),      # per-block dilated filter conv taps
        bf=rnd(keys[3], (B, R, 1)),
        wg=rnd(keys[4], (B, 2, R, R)),      # per-block dilated gate conv taps
        bg=rnd(keys[5], (B, R, 1)),
        wres=rnd(keys[6], (B, R, R)),       # 1x1 residual conv
        bres=rnd(keys[7], (B, R, 1)),
        wskip=rnd(keys[8], (B, S, R)),      # 1x1 skip conv
        bskip=rnd(keys[9], (B, S, 1)),
        alpha=jnp.full((numOutputLayers, S, 1), 0.25, jnp.float32),  # PReLU
    )
    out_layers = []
    k = keys[10]
    for o in range(numOutputLayers):
        k, k1, k2 = jax.random.split(k, 3)
        oc = nChannels if o == numOutputLayers - 1 else S
        out_layers.append((rnd(k1, (oc, S)), rnd(k2, (oc, 1))))
    params['out_layers'] = out_layers
    return params


# ----------------------------------------------------------------------------
# Pure-JAX reference (lax.conv_general_dilated) for correctness check
# ----------------------------------------------------------------------------
def _conv1d(x, w, dilation):
    return lax.conv_general_dilated(
        x, w, window_strides=(1,), padding='VALID',
        rhs_dilation=(dilation,), dimension_numbers=('NCH', 'OIH', 'NCH'),
        precision=lax.Precision.HIGHEST)


def reference_forward(x, params, cfg):
    nLayers, nStacks, numOutputLayers, nChannels = cfg
    xin = x.reshape(1, 1, -1).astype(jnp.float32)
    h = _conv1d(xin, params['w0'][..., None], 1) + params['b0'][None]

    skip_offset = (2 ** nLayers) * nStacks
    skip_sum = None
    for i in range(nLayers * nStacks):
        d = 2 ** (i % nLayers)
        skip_offset -= d
        wf_oiw = jnp.transpose(params['wf'][i], (1, 2, 0))
        wg_oiw = jnp.transpose(params['wg'][i], (1, 2, 0))
        f = jnp.tanh(_conv1d(h, wf_oiw, d) + params['bf'][i][None])
        g = jax.nn.sigmoid(_conv1d(h, wg_oiw, d) + params['bg'][i][None])
        z = f * g
        x_res = _conv1d(z, params['wres'][i][..., None], 1) + params['bres'][i][None]
        x_skip = _conv1d(z, params['wskip'][i][..., None], 1) + params['bskip'][i][None]
        x_skip = x_skip[:, :, skip_offset - 1:]
        h = x_res + h[:, :, -x_res.shape[2]:]
        skip_sum = x_skip if i == 0 else skip_sum + x_skip

    out = skip_sum
    for o in range(numOutputLayers):
        a = params['alpha'][o][None]
        out = jnp.where(out >= 0, out, a * out)
        w, b = params['out_layers'][o]
        out = _conv1d(out, w[..., None], 1) + b[None]
    return out


if __name__ == "__main__":
    # Small config consistent with the module's constructor.
    nLayers, nStacks = 3, 2
    nChannels, nResChannels, nSkipChannels = 4, 8, 8
    numOutputLayers = 2
    T = 400                                  # raw 1-D input length (small demo)

    key = jax.random.PRNGKey(0)
    kx, kp = jax.random.split(key)
    x = jax.random.normal(kx, (T,), jnp.float32)
    params = init_params(kp, nLayers, nStacks, nChannels, nResChannels,
                         nSkipChannels, numOutputLayers)
    cfg = (nLayers, nStacks, numOutputLayers, nChannels)

    ref = reference_forward(x, params, cfg)

    # f32-weight path: strict check of the kernel math (fusion/roll/tiling).
    out = jax.block_until_ready(
        wavenet_forward(x, params, cfg, tile_out=128, weight_dtype=jnp.float32))
    assert out.shape == ref.shape, (out.shape, ref.shape)
    np.testing.assert_allclose(np.asarray(out), np.asarray(ref),
                               rtol=1e-3, atol=1e-3)

    # bf16-weight path (production setting for v6e/v7x MXU), looser tolerance.
    out_bf16 = jax.block_until_ready(
        wavenet_forward(x, params, cfg, tile_out=128, weight_dtype=jnp.bfloat16))
    np.testing.assert_allclose(np.asarray(out_bf16), np.asarray(ref),
                               rtol=2e-2, atol=2e-2)

    print("KERNEL_OK")
</pallas_src>

<mosaic_0001>
module attributes {stable_mosaic.version = 11 : i64} {
  func.func @_wavenet_kernel(%arg0: i32, %arg1: memref<1x640xf32, #tpu.memory_space<vmem>>, %arg2: memref<8x1xf32, #tpu.memory_space<vmem>>, %arg3: memref<8x1xf32, #tpu.memory_space<vmem>>, %arg4: memref<6x16x16xf32, #tpu.memory_space<vmem>>, %arg5: memref<6x16x1xf32, #tpu.memory_space<vmem>>, %arg6: memref<6x16x8xf32, #tpu.memory_space<vmem>>, %arg7: memref<6x16x1xf32, #tpu.memory_space<vmem>>, %arg8: memref<2x8x1xf32, #tpu.memory_space<vmem>>, %arg9: memref<8x8xf32, #tpu.memory_space<vmem>>, %arg10: memref<8x1xf32, #tpu.memory_space<vmem>>, %arg11: memref<8x8xf32, #tpu.memory_space<vmem>>, %arg12: memref<8x1xf32, #tpu.memory_space<vmem>>, %arg13: memref<8x128xf32, #tpu.memory_space<vmem>>) attributes {dimension_semantics = [#tpu.dimension_semantics<parallel>], iteration_bounds = array<i64: 4>, scalar_prefetch = 0 : i64, scratch_operands = 0 : i64, tpu.core_type = #tpu.core_type<tc>, window_params = [{pipeline_mode = #tpu.pipeline_mode<synchronous>, transform_indices = @transform_0, window_bounds = array<i64: 1, 640>}, {pipeline_mode = #tpu.pipeline_mode<synchronous>, transform_indices = @transform_1, window_bounds = array<i64: 8, 1>}, {pipeline_mode = #tpu.pipeline_mode<synchronous>, transform_indices = @transform_2, window_bounds = array<i64: 8, 1>}, {pipeline_mode = #tpu.pipeline_mode<synchronous>, transform_indices = @transform_3, window_bounds = array<i64: 6, 16, 16>}, {pipeline_mode = #tpu.pipeline_mode<synchronous>, transform_indices = @transform_4, window_bounds = array<i64: 6, 16, 1>}, {pipeline_mode = #tpu.pipeline_mode<synchronous>, transform_indices = @transform_5, window_bounds = array<i64: 6, 16, 8>}, {pipeline_mode = #tpu.pipeline_mode<synchronous>, transform_indices = @transform_6, window_bounds = array<i64: 6, 16, 1>}, {pipeline_mode = #tpu.pipeline_mode<synchronous>, transform_indices = @transform_7, window_bounds = array<i64: 2, 8, 1>}, {pipeline_mode = #tpu.pipeline_mode<synchronous>, transform_indices = @transform_8, window_bounds = array<i64: 8, 8>}, {pipeline_mode = #tpu.pipeline_mode<synchronous>, transform_indices = @transform_9, window_bounds = array<i64: 8, 1>}, {pipeline_mode = #tpu.pipeline_mode<synchronous>, transform_indices = @transform_10, window_bounds = array<i64: 8, 8>}, {pipeline_mode = #tpu.pipeline_mode<synchronous>, transform_indices = @transform_11, window_bounds = array<i64: 8, 1>}, {transform_indices = @transform_12, window_bounds = array<i64: 8, 128>}]} {
    %c128_i32 = arith.constant 128 : i32
    %0 = arith.muli %arg0, %c128_i32 : i32
    %1 = tpu.assume_multiple %0, 128 : i32
    %c0 = arith.constant 0 : index
    %2 = arith.index_cast %1 : i32 to index
    %3 = vector.load %arg1[%c0, %2] : memref<1x640xf32, #tpu.memory_space<vmem>>, vector<1x256xf32>
    %c0_0 = arith.constant 0 : index
    %c0_1 = arith.constant 0 : index
    %4 = vector.load %arg2[%c0_0, %c0_1] : memref<8x1xf32, #tpu.memory_space<vmem>>, vector<8x1xf32>
    %5 = vector.broadcast %4 : vector<8x1xf32> to vector<8x256xf32>
    %6 = vector.broadcast %3 : vector<1x256xf32> to vector<8x256xf32>
    %7 = arith.mulf %5, %6 : vector<8x256xf32>
    %c0_2 = arith.constant 0 : index
    %c0_3 = arith.constant 0 : index
    %8 = vector.load %arg3[%c0_2, %c0_3] : memref<8x1xf32, #tpu.memory_space<vmem>>, vector<8x1xf32>
    %9 = vector.broadcast %8 : vector<8x1xf32> to vector<8x256xf32>
    %10 = arith.addf %7, %9 : vector<8x256xf32>
    %c1_i32 = arith.constant 1 : i32
    %11 = tpu.dynamic_rotate %10 by %c1_i32 dim 1 : vector<8x256xf32>, i32 -> vector<8x256xf32>
    %12 = tpu.concatenate %11, %10 in 0 : vector<8x256xf32>, vector<8x256xf32> -> vector<16x256xf32>
    %c0_4 = arith.constant 0 : index
    %c0_5 = arith.constant 0 : index
    %c0_6 = arith.constant 0 : index
    %13 = vector.load %arg4[%c0_4, %c0_5, %c0_6] : memref<6x16x16xf32, #tpu.memory_space<vmem>>, vector<1x16x16xf32>
    %14 = vector.shape_cast %13 : vector<1x16x16xf32> to vector<16x16xf32>
    %cst = arith.constant dense<0.000000e+00> : vector<16x256xf32>
    %15 = tpu.matmul %14, %12, %cst {dimension_numbers = #tpu.dot_dimension_numbers<[1], [0], [0], [1], [0, 0, 1, 1], [], []>} : vector<16x16xf32>, vector<16x256xf32>, vector<16x256xf32> -> vector<16x256xf32>
    %c0_7 = arith.constant 0 : index
    %c0_8 = arith.constant 0 : index
    %c0_9 = arith.constant 0 : index
    %16 = vector.load %arg5[%c0_7, %c0_8, %c0_9] : memref<6x16x1xf32, #tpu.memory_space<vmem>>, vector<1x16x1xf32>
    %17 = vector.shape_cast %16 : vector<1x16x1xf32> to vector<16x1xf32>
    %18 = vector.broadcast %17 : vector<16x1xf32> to vector<16x256xf32>
    %19 = arith.addf %15, %18 : vector<16x256xf32>
    %20 = vector.extract_strided_slice %19 {offsets = [0, 0], sizes = [8, 256], strides = [1, 1]} : vector<16x256xf32> to vector<8x256xf32>
    %21 = vector.extract_strided_slice %19 {offsets = [8, 0], sizes = [8, 256], strides = [1, 1]} : vector<16x256xf32> to vector<8x256xf32>
    %22 = math.tanh %20 : vector<8x256xf32>
    %cst_10 = arith.constant 5.000000e-01 : f32
    %23 = vector.broadcast %cst_10 : f32 to vector<8x256xf32>
    %24 = arith.mulf %23, %21 : vector<8x256xf32>
    %25 = math.tanh %24 : vector<8x256xf32>
    %cst_11 = arith.constant 5.000000e-01 : f32
    %26 = vector.broadcast %cst_11 : f32 to vector<8x256xf32>
    %27 = arith.mulf %26, %25 : vector<8x256xf32>
    %cst_12 = arith.constant 5.000000e-01 : f32
    %28 = vector.broadcast %cst_12 : f32 to vector<8x256xf32>
    %29 = arith.addf %27, %28 : vector<8x256xf32>
    %30 = arith.mulf %22, %29 : vector<8x256xf32>
    %c0_13 = arith.constant 0 : index
    %c0_14 = arith.constant 0 : index
    %c0_15 = arith.constant 0 : index
    %31 = vector.load %arg6[%c0_13, %c0_14, %c0_15] : memref<6x16x8xf32, #tpu.memory_space<vmem>>, vector<1x16x8xf32>
    %32 = vector.shape_cast %31 : vector<1x16x8xf32> to vector<16x8xf32>
    %cst_16 = arith.constant dense<0.000000e+00> : vector<16x256xf32>
    %33 = tpu.matmul %32, %30, %cst_16 {dimension_numbers = #tpu.dot_dimension_numbers<[1], [0], [0], [1], [0, 0, 1, 1], [], []>} : vector<16x8xf32>, vector<8x256xf32>, vector<16x256xf32> -> vector<16x256xf32>
    %c0_17 = arith.constant 0 : index
    %c0_18 = arith.constant 0 : index
    %c0_19 = arith.constant 0 : index
    %34 = vector.load %arg7[%c0_17, %c0_18, %c0_19] : memref<6x16x1xf32, #tpu.memory_space<vmem>>, vector<1x16x1xf32>
    %35 = vector.shape_cast %34 : vector<1x16x1xf32> to vector<16x1xf32>
    %36 = vector.broadcast %35 : vector<16x1xf32> to vector<16x256xf32>
    %37 = arith.addf %33, %36 : vector<16x256xf32>
    %38 = vector.extract_strided_slice %37 {offsets = [0, 0], sizes = [8, 256], strides = [1, 1]} : vector<16x256xf32> to vector<8x256xf32>
    %39 = arith.addf %38, %10 : vector<8x256xf32>
    %40 = vector.extract_strided_slice %37 {offsets = [8, 0], sizes = [8, 256], strides = [1, 1]} : vector<16x256xf32> to vector<8x256xf32>
    %c2_i32 = arith.constant 2 : i32
    %41 = tpu.dynamic_rotate %39 by %c2_i32 dim 1 : vector<8x256xf32>, i32 -> vector<8x256xf32>
    %42 = tpu.concatenate %41, %39 in 0 : vector<8x256xf32>, vector<8x256xf32> -> vector<16x256xf32>
    %c1 = arith.constant 1 : index
    %c0_20 = arith.constant 0 : index
    %c0_21 = arith.constant 0 : index
    %43 = vector.load %arg4[%c1, %c0_20, %c0_21] : memref<6x16x16xf32, #tpu.memory_space<vmem>>, vector<1x16x16xf32>
    %44 = vector.shape_cast %43 : vector<1x16x16xf32> to vector<16x16xf32>
    %cst_22 = arith.constant dense<0.000000e+00> : vector<16x256xf32>
    %45 = tpu.matmul %44, %42, %cst_22 {dimension_numbers = #tpu.dot_dimension_numbers<[1], [0], [0], [1], [0, 0, 1, 1], [], []>} : vector<16x16xf32>, vector<16x256xf32>, vector<16x256xf32> -> vector<16x256xf32>
    %c1_23 = arith.constant 1 : index
    %c0_24 = arith.constant 0 : index
    %c0_25 = arith.constant 0 : index
    %46 = vector.load %arg5[%c1_23, %c0_24, %c0_25] : memref<6x16x1xf32, #tpu.memory_space<vmem>>, vector<1x16x1xf32>
    %47 = vector.shape_cast %46 : vector<1x16x1xf32> to vector<16x1xf32>
    %48 = vector.broadcast %47 : vector<16x1xf32> to vector<16x256xf32>
    %49 = arith.addf %45, %48 : vector<16x256xf32>
    %50 = vector.extract_strided_slice %49 {offsets = [0, 0], sizes = [8, 256], strides = [1, 1]} : vector<16x256xf32> to vector<8x256xf32>
    %51 = vector.extract_strided_slice %49 {offsets = [8, 0], sizes = [8, 256], strides = [1, 1]} : vector<16x256xf32> to vector<8x256xf32>
    %52 = math.tanh %50 : vector<8x256xf32>
    %cst_26 = arith.constant 5.000000e-01 : f32
    %53 = vector.broadcast %cst_26 : f32 to vector<8x256xf32>
    %54 = arith.mulf %53, %51 : vector<8x256xf32>
    %55 = math.tanh %54 : vector<8x256xf32>
    %cst_27 = arith.constant 5.000000e-01 : f32
    %56 = vector.broadcast %cst_27 : f32 to vector<8x256xf32>
    %57 = arith.mulf %56, %55 : vector<8x256xf32>
    %cst_28 = arith.constant 5.000000e-01 : f32
    %58 = vector.broadcast %cst_28 : f32 to vector<8x256xf32>
    %59 = arith.addf %57, %58 : vector<8x256xf32>
    %60 = arith.mulf %52, %59 : vector<8x256xf32>
    %c1_29 = arith.constant 1 : index
    %c0_30 = arith.constant 0 : index
    %c0_31 = arith.constant 0 : index
    %61 = vector.load %arg6[%c1_29, %c0_30, %c0_31] : memref<6x16x8xf32, #tpu.memory_space<vmem>>, vector<1x16x8xf32>
    %62 = vector.shape_cast %61 : vector<1x16x8xf32> to vector<16x8xf32>
    %cst_32 = arith.constant dense<0.000000e+00> : vector<16x256xf32>
    %63 = tpu.matmul %62, %60, %cst_32 {dimension_numbers = #tpu.dot_dimension_numbers<[1], [0], [0], [1], [0, 0, 1, 1], [], []>} : vector<16x8xf32>, vector<8x256xf32>, vector<16x256xf32> -> vector<16x256xf32>
    %c1_33 = arith.constant 1 : index
    %c0_34 = arith.constant 0 : index
    %c0_35 = arith.constant 0 : index
    %64 = vector.load %arg7[%c1_33, %c0_34, %c0_35] : memref<6x16x1xf32, #tpu.memory_space<vmem>>, vector<1x16x1xf32>
    %65 = vector.shape_cast %64 : vector<1x16x1xf32> to vector<16x1xf32>
    %66 = vector.broadcast %65 : vector<16x1xf32> to vector<16x256xf32>
    %67 = arith.addf %63, %66 : vector<16x256xf32>
    %68 = vector.extract_strided_slice %67 {offsets = [0, 0], sizes = [8, 256], strides = [1, 1]} : vector<16x256xf32> to vector<8x256xf32>
    %69 = arith.addf %68, %39 : vector<8x256xf32>
    %70 = vector.extract_strided_slice %67 {offsets = [8, 0], sizes = [8, 256], strides = [1, 1]} : vector<16x256xf32> to vector<8x256xf32>
    %71 = arith.addf %40, %70 : vector<8x256xf32>
    %c4_i32 = arith.constant 4 : i32
    %72 = tpu.dynamic_rotate %69 by %c4_i32 dim 1 : vector<8x256xf32>, i32 -> vector<8x256xf32>
    %73 = tpu.concatenate %72, %69 in 0 : vector<8x256xf32>, vector<8x256xf32> -> vector<16x256xf32>
    %c2 = arith.constant 2 : index
    %c0_36 = arith.constant 0 : index
    %c0_37 = arith.constant 0 : index
    %74 = vector.load %arg4[%c2, %c0_36, %c0_37] : memref<6x16x16xf32, #tpu.memory_space<vmem>>, vector<1x16x16xf32>
    %75 = vector.shape_cast %74 : vector<1x16x16xf32> to vector<16x16xf32>
    %cst_38 = arith.constant dense<0.000000e+00> : vector<16x256xf32>
    %76 = tpu.matmul %75, %73, %cst_38 {dimension_numbers = #tpu.dot_dimension_numbers<[1], [0], [0], [1], [0, 0, 1, 1], [], []>} : vector<16x16xf32>, vector<16x256xf32>, vector<16x256xf32> -> vector<16x256xf32>
    %c2_39 = arith.constant 2 : index
    %c0_40 = arith.constant 0 : index
    %c0_41 = arith.constant 0 : index
    %77 = vector.load %arg5[%c2_39, %c0_40, %c0_41] : memref<6x16x1xf32, #tpu.memory_space<vmem>>, vector<1x16x1xf32>
    %78 = vector.shape_cast %77 : vector<1x16x1xf32> to vector<16x1xf32>
    %79 = vector.broadcast %78 : vector<16x1xf32> to vector<16x256xf32>
    %80 = arith.addf %76, %79 : vector<16x256xf32>
    %81 = vector.extract_strided_slice %80 {offsets = [0, 0], sizes = [8, 256], strides = [1, 1]} : vector<16x256xf32> to vector<8x256xf32>
    %82 = vector.extract_strided_slice %80 {offsets = [8, 0], sizes = [8, 256], strides = [1, 1]} : vector<16x256xf32> to vector<8x256xf32>
    %83 = math.tanh %81 : vector<8x256xf32>
    %cst_42 = arith.constant 5.000000e-01 : f32
    %84 = vector.broadcast %cst_42 : f32 to vector<8x256xf32>
    %85 = arith.mulf %84, %82 : vector<8x256xf32>
    %86 = math.tanh %85 : vector<8x256xf32>
    %cst_43 = arith.constant 5.000000e-01 : f32
    %87 = vector.broadcast %cst_43 : f32 to vector<8x256xf32>
    %88 = arith.mulf %87, %86 : vector<8x256xf32>
    %cst_44 = arith.constant 5.000000e-01 : f32
    %89 = vector.broadcast %cst_44 : f32 to vector<8x256xf32>
    %90 = arith.addf %88, %89 : vector<8x256xf32>
    %91 = arith.mulf %83, %90 : vector<8x256xf32>
    %c2_45 = arith.constant 2 : index
    %c0_46 = arith.constant 0 : index
    %c0_47 = arith.constant 0 : index
    %92 = vector.load %arg6[%c2_45, %c0_46, %c0_47] : memref<6x16x8xf32, #tpu.memory_space<vmem>>, vector<1x16x8xf32>
    %93 = vector.shape_cast %92 : vector<1x16x8xf32> to vector<16x8xf32>
    %cst_48 = arith.constant dense<0.000000e+00> : vector<16x256xf32>
    %94 = tpu.matmul %93, %91, %cst_48 {dimension_numbers = #tpu.dot_dimension_numbers<[1], [0], [0], [1], [0, 0, 1, 1], [], []>} : vector<16x8xf32>, vector<8x256xf32>, vector<16x256xf32> -> vector<16x256xf32>
    %c2_49 = arith.constant 2 : index
    %c0_50 = arith.constant 0 : index
    %c0_51 = arith.constant 0 : index
    %95 = vector.load %arg7[%c2_49, %c0_50, %c0_51] : memref<6x16x1xf32, #tpu.memory_space<vmem>>, vector<1x16x1xf32>
    %96 = vector.shape_cast %95 : vector<1x16x1xf32> to vector<16x1xf32>
    %97 = vector.broadcast %96 : vector<16x1xf32> to vector<16x256xf32>
    %98 = arith.addf %94, %97 : vector<16x256xf32>
    %99 = vector.extract_strided_slice %98 {offsets = [0, 0], sizes = [8, 256], strides = [1, 1]} : vector<16x256xf32> to vector<8x256xf32>
    %100 = arith.addf %99, %69 : vector<8x256xf32>
    %101 = vector.extract_strided_slice %98 {offsets = [8, 0], sizes = [8, 256], strides = [1, 1]} : vector<16x256xf32> to vector<8x256xf32>
    %102 = arith.addf %71, %101 : vector<8x256xf32>
    %c1_i32_52 = arith.constant 1 : i32
    %103 = tpu.dynamic_rotate %100 by %c1_i32_52 dim 1 : vector<8x256xf32>, i32 -> vector<8x256xf32>
    %104 = tpu.concatenate %103, %100 in 0 : vector<8x256xf32>, vector<8x256xf32> -> vector<16x256xf32>
    %c3 = arith.constant 3 : index
    %c0_53 = arith.constant 0 : index
    %c0_54 = arith.constant 0 : index
    %105 = vector.load %arg4[%c3, %c0_53, %c0_54] : memref<6x16x16xf32, #tpu.memory_space<vmem>>, vector<1x16x16xf32>
    %106 = vector.shape_cast %105 : vector<1x16x16xf32> to vector<16x16xf32>
    %cst_55 = arith.constant dense<0.000000e+00> : vector<16x256xf32>
    %107 = tpu.matmul %106, %104, %cst_55 {dimension_numbers = #tpu.dot_dimension_numbers<[1], [0], [0], [1], [0, 0, 1, 1], [], []>} : vector<16x16xf32>, vector<16x256xf32>, vector<16x256xf32> -> vector<16x256xf32>
    %c3_56 = arith.constant 3 : index
    %c0_57 = arith.constant 0 : index
    %c0_58 = arith.constant 0 : index
    %108 = vector.load %arg5[%c3_56, %c0_57, %c0_58] : memref<6x16x1xf32, #tpu.memory_space<vmem>>, vector<1x16x1xf32>
    %109 = vector.shape_cast %108 : vector<1x16x1xf32> to vector<16x1xf32>
    %110 = vector.broadcast %109 : vector<16x1xf32> to vector<16x256xf32>
    %111 = arith.addf %107, %110 : vector<16x256xf32>
    %112 = vector.extract_strided_slice %111 {offsets = [0, 0], sizes = [8, 256], strides = [1, 1]} : vector<16x256xf32> to vector<8x256xf32>
    %113 = vector.extract_strided_slice %111 {offsets = [8, 0], sizes = [8, 256], strides = [1, 1]} : vector<16x256xf32> to vector<8x256xf32>
    %114 = math.tanh %112 : vector<8x256xf32>
    %cst_59 = arith.constant 5.000000e-01 : f32
    %115 = vector.broadcast %cst_59 : f32 to vector<8x256xf32>
    %116 = arith.mulf %115, %113 : vector<8x256xf32>
    %117 = math.tanh %116 : vector<8x256xf32>
    %cst_60 = arith.constant 5.000000e-01 : f32
    %118 = vector.broadcast %cst_60 : f32 to vector<8x256xf32>
    %119 = arith.mulf %118, %117 : vector<8x256xf32>
    %cst_61 = arith.constant 5.000000e-01 : f32
    %120 = vector.broadcast %cst_61 : f32 to vector<8x256xf32>
    %121 = arith.addf %119, %120 : vector<8x256xf32>
    %122 = arith.mulf %114, %121 : vector<8x256xf32>
    %c3_62 = arith.constant 3 : index
    %c0_63 = arith.constant 0 : index
    %c0_64 = arith.constant 0 : index
    %123 = vector.load %arg6[%c3_62, %c0_63, %c0_64] : memref<6x16x8xf32, #tpu.memory_space<vmem>>, vector<1x16x8xf32>
    %124 = vector.shape_cast %123 : vector<1x16x8xf32> to vector<16x8xf32>
    %cst_65 = arith.constant dense<0.000000e+00> : vector<16x256xf32>
    %125 = tpu.matmul %124, %122, %cst_65 {dimension_numbers = #tpu.dot_dimension_numbers<[1], [0], [0], [1], [0, 0, 1, 1], [], []>} : vector<16x8xf32>, vector<8x256xf32>, vector<16x256xf32> -> vector<16x256xf32>
    %c3_66 = arith.constant 3 : index
    %c0_67 = arith.constant 0 : index
    %c0_68 = arith.constant 0 : index
    %126 = vector.load %arg7[%c3_66, %c0_67, %c0_68] : memref<6x16x1xf32, #tpu.memory_space<vmem>>, vector<1x16x1xf32>
    %127 = vector.shape_cast %126 : vector<1x16x1xf32> to vector<16x1xf32>
    %128 = vector.broadcast %127 : vector<16x1xf32> to vector<16x256xf32>
    %129 = arith.addf %125, %128 : vector<16x256xf32>
    %130 = vector.extract_strided_slice %129 {offsets = [0, 0], sizes = [8, 256], strides = [1, 1]} : vector<16x256xf32> to vector<8x256xf32>
    %131 = arith.addf %130, %100 : vector<8x256xf32>
    %132 = vector.extract_strided_slice %129 {offsets = [8, 0], sizes = [8, 256], strides = [1, 1]} : vector<16x256xf32> to vector<8x256xf32>
    %133 = arith.addf %102, %132 : vector<8x256xf32>
    %c2_i32_69 = arith.constant 2 : i32
    %134 = tpu.dynamic_rotate %131 by %c2_i32_69 dim 1 : vector<8x256xf32>, i32 -> vector<8x256xf32>
    %135 = tpu.concatenate %134, %131 in 0 : vector<8x256xf32>, vector<8x256xf32> -> vector<16x256xf32>
    %c4 = arith.constant 4 : index
    %c0_70 = arith.constant 0 : index
    %c0_71 = arith.constant 0 : index
    %136 = vector.load %arg4[%c4, %c0_70, %c0_71] : memref<6x16x16xf32, #tpu.memory_space<vmem>>, vector<1x16x16xf32>
    %137 = vector.shape_cast %136 : vector<1x16x16xf32> to vector<16x16xf32>
    %cst_72 = arith.constant dense<0.000000e+00> : vector<16x256xf32>
    %138 = tpu.matmul %137, %135, %cst_72 {dimension_numbers = #tpu.dot_dimension_numbers<[1], [0], [0], [1], [0, 0, 1, 1], [], []>} : vector<16x16xf32>, vector<16x256xf32>, vector<16x256xf32> -> vector<16x256xf32>
    %c4_73 = arith.constant 4 : index
    %c0_74 = arith.constant 0 : index
    %c0_75 = arith.constant 0 : index
    %139 = vector.load %arg5[%c4_73, %c0_74, %c0_75] : memref<6x16x1xf32, #tpu.memory_space<vmem>>, vector<1x16x1xf32>
    %140 = vector.shape_cast %139 : vector<1x16x1xf32> to vector<16x1xf32>
    %141 = vector.broadcast %140 : vector<16x1xf32> to vector<16x256xf32>
    %142 = arith.addf %138, %141 : vector<16x256xf32>
    %143 = vector.extract_strided_slice %142 {offsets = [0, 0], sizes = [8, 256], strides = [1, 1]} : vector<16x256xf32> to vector<8x256xf32>
    %144 = vector.extract_strided_slice %142 {offsets = [8, 0], sizes = [8, 256], strides = [1, 1]} : vector<16x256xf32> to vector<8x256xf32>
    %145 = math.tanh %143 : vector<8x256xf32>
    %cst_76 = arith.constant 5.000000e-01 : f32
    %146 = vector.broadcast %cst_76 : f32 to vector<8x256xf32>
    %147 = arith.mulf %146, %144 : vector<8x256xf32>
    %148 = math.tanh %147 : vector<8x256xf32>
    %cst_77 = arith.constant 5.000000e-01 : f32
    %149 = vector.broadcast %cst_77 : f32 to vector<8x256xf32>
    %150 = arith.mulf %149, %148 : vector<8x256xf32>
    %cst_78 = arith.constant 5.000000e-01 : f32
    %151 = vector.broadcast %cst_78 : f32 to vector<8x256xf32>
    %152 = arith.addf %150, %151 : vector<8x256xf32>
    %153 = arith.mulf %145, %152 : vector<8x256xf32>
    %c4_79 = arith.constant 4 : index
    %c0_80 = arith.constant 0 : index
    %c0_81 = arith.constant 0 : index
    %154 = vector.load %arg6[%c4_79, %c0_80, %c0_81] : memref<6x16x8xf32, #tpu.memory_space<vmem>>, vector<1x16x8xf32>
    %155 = vector.shape_cast %154 : vector<1x16x8xf32> to vector<16x8xf32>
    %cst_82 = arith.constant dense<0.000000e+00> : vector<16x256xf32>
    %156 = tpu.matmul %155, %153, %cst_82 {dimension_numbers = #tpu.dot_dimension_numbers<[1], [0], [0], [1], [0, 0, 1, 1], [], []>} : vector<16x8xf32>, vector<8x256xf32>, vector<16x256xf32> -> vector<16x256xf32>
    %c4_83 = arith.constant 4 : index
    %c0_84 = arith.constant 0 : index
    %c0_85 = arith.constant 0 : index
    %157 = vector.load %arg7[%c4_83, %c0_84, %c0_85] : memref<6x16x1xf32, #tpu.memory_space<vmem>>, vector<1x16x1xf32>
    %158 = vector.shape_cast %157 : vector<1x16x1xf32> to vector<16x1xf32>
    %159 = vector.broadcast %158 : vector<16x1xf32> to vector<16x256xf32>
    %160 = arith.addf %156, %159 : vector<16x256xf32>
    %161 = vector.extract_strided_slice %160 {offsets = [0, 0], sizes = [8, 256], strides = [1, 1]} : vector<16x256xf32> to vector<8x256xf32>
    %162 = arith.addf %161, %131 : vector<8x256xf32>
    %163 = vector.extract_strided_slice %160 {offsets = [8, 0], sizes = [8, 256], strides = [1, 1]} : vector<16x256xf32> to vector<8x256xf32>
    %164 = arith.addf %133, %163 : vector<8x256xf32>
    %c4_i32_86 = arith.constant 4 : i32
    %165 = tpu.dynamic_rotate %162 by %c4_i32_86 dim 1 : vector<8x256xf32>, i32 -> vector<8x256xf32>
    %166 = tpu.concatenate %165, %162 in 0 : vector<8x256xf32>, vector<8x256xf32> -> vector<16x256xf32>
    %c5 = arith.constant 5 : index
    %c0_87 = arith.constant 0 : index
    %c0_88 = arith.constant 0 : index
    %167 = vector.load %arg4[%c5, %c0_87, %c0_88] : memref<6x16x16xf32, #tpu.memory_space<vmem>>, vector<1x16x16xf32>
    %168 = vector.shape_cast %167 : vector<1x16x16xf32> to vector<16x16xf32>
    %cst_89 = arith.constant dense<0.000000e+00> : vector<16x256xf32>
    %169 = tpu.matmul %168, %166, %cst_89 {dimension_numbers = #tpu.dot_dimension_numbers<[1], [0], [0], [1], [0, 0, 1, 1], [], []>} : vector<16x16xf32>, vector<16x256xf32>, vector<16x256xf32> -> vector<16x256xf32>
    %c5_90 = arith.constant 5 : index
    %c0_91 = arith.constant 0 : index
    %c0_92 = arith.constant 0 : index
    %170 = vector.load %arg5[%c5_90, %c0_91, %c0_92] : memref<6x16x1xf32, #tpu.memory_space<vmem>>, vector<1x16x1xf32>
    %171 = vector.shape_cast %170 : vector<1x16x1xf32> to vector<16x1xf32>
    %172 = vector.broadcast %171 : vector<16x1xf32> to vector<16x256xf32>
    %173 = arith.addf %169, %172 : vector<16x256xf32>
    %174 = vector.extract_strided_slice %173 {offsets = [0, 0], sizes = [8, 256], strides = [1, 1]} : vector<16x256xf32> to vector<8x256xf32>
    %175 = vector.extract_strided_slice %173 {offsets = [8, 0], sizes = [8, 256], strides = [1, 1]} : vector<16x256xf32> to vector<8x256xf32>
    %176 = math.tanh %174 : vector<8x256xf32>
    %cst_93 = arith.constant 5.000000e-01 : f32
    %177 = vector.broadcast %cst_93 : f32 to vector<8x256xf32>
    %178 = arith.mulf %177, %175 : vector<8x256xf32>
    %179 = math.tanh %178 : vector<8x256xf32>
    %cst_94 = arith.constant 5.000000e-01 : f32
    %180 = vector.broadcast %cst_94 : f32 to vector<8x256xf32>
    %181 = arith.mulf %180, %179 : vector<8x256xf32>
    %cst_95 = arith.constant 5.000000e-01 : f32
    %182 = vector.broadcast %cst_95 : f32 to vector<8x256xf32>
    %183 = arith.addf %181, %182 : vector<8x256xf32>
    %184 = arith.mulf %176, %183 : vector<8x256xf32>
    %c5_96 = arith.constant 5 : index
    %c0_97 = arith.constant 0 : index
    %c0_98 = arith.constant 0 : index
    %185 = vector.load %arg6[%c5_96, %c0_97, %c0_98] : memref<6x16x8xf32, #tpu.memory_space<vmem>>, vector<1x16x8xf32>
    %186 = vector.shape_cast %185 : vector<1x16x8xf32> to vector<16x8xf32>
    %cst_99 = arith.constant dense<0.000000e+00> : vector<16x256xf32>
    %187 = tpu.matmul %186, %184, %cst_99 {dimension_numbers = #tpu.dot_dimension_numbers<[1], [0], [0], [1], [0, 0, 1, 1], [], []>} : vector<16x8xf32>, vector<8x256xf32>, vector<16x256xf32> -> vector<16x256xf32>
    %c5_100 = arith.constant 5 : index
    %c0_101 = arith.constant 0 : index
    %c0_102 = arith.constant 0 : index
    %188 = vector.load %arg7[%c5_100, %c0_101, %c0_102] : memref<6x16x1xf32, #tpu.memory_space<vmem>>, vector<1x16x1xf32>
    %189 = vector.shape_cast %188 : vector<1x16x1xf32> to vector<16x1xf32>
    %190 = vector.broadcast %189 : vector<16x1xf32> to vector<16x256xf32>
    %191 = arith.addf %187, %190 : vector<16x256xf32>
    %192 = vector.extract_strided_slice %191 {offsets = [8, 0], sizes = [8, 256], strides = [1, 1]} : vector<16x256xf32> to vector<8x256xf32>
    %193 = arith.addf %164, %192 : vector<8x256xf32>
    %194 = vector.extract_strided_slice %193 {offsets = [0, 128], sizes = [8, 128], strides = [1, 1]} : vector<8x256xf32> to vector<8x128xf32>
    %c0_103 = arith.constant 0 : index
    %c0_104 = arith.constant 0 : index
    %c0_105 = arith.constant 0 : index
    %195 = vector.load %arg8[%c0_103, %c0_104, %c0_105] : memref<2x8x1xf32, #tpu.memory_space<vmem>>, vector<1x8x1xf32>
    %196 = vector.shape_cast %195 : vector<1x8x1xf32> to vector<8x1xf32>
    %cst_106 = arith.constant 0.000000e+00 : f32
    %197 = vector.broadcast %cst_106 : f32 to vector<8x128xf32>
    %198 = arith.cmpf oge, %194, %197 : vector<8x128xf32>
    %199 = vector.broadcast %196 : vector<8x1xf32> to vector<8x128xf32>
    %200 = arith.mulf %199, %194 : vector<8x128xf32>
    %201 = arith.select %198, %194, %200 : vector<8x128xi1>, vector<8x128xf32>
    %c0_107 = arith.constant 0 : index
    %c0_108 = arith.constant 0 : index
    %202 = vector.load %arg9[%c0_107, %c0_108] : memref<8x8xf32, #tpu.memory_space<vmem>>, vector<8x8xf32>
    %c0_109 = arith.constant 0 : index
    %c0_110 = arith.constant 0 : index
    %203 = vector.load %arg10[%c0_109, %c0_110] : memref<8x1xf32, #tpu.memory_space<vmem>>, vector<8x1xf32>
    %cst_111 = arith.constant dense<0.000000e+00> : vector<8x128xf32>
    %204 = tpu.matmul %202, %201, %cst_111 {dimension_numbers = #tpu.dot_dimension_numbers<[1], [0], [0], [1], [0, 0, 1, 1], [], []>} : vector<8x8xf32>, vector<8x128xf32>, vector<8x128xf32> -> vector<8x128xf32>
    %205 = vector.broadcast %203 : vector<8x1xf32> to vector<8x128xf32>
    %206 = arith.addf %204, %205 : vector<8x128xf32>
    %c1_112 = arith.constant 1 : index
    %c0_113 = arith.constant 0 : index
    %c0_114 = arith.constant 0 : index
    %207 = vector.load %arg8[%c1_112, %c0_113, %c0_114] : memref<2x8x1xf32, #tpu.memory_space<vmem>>, vector<1x8x1xf32>
    %208 = vector.shape_cast %207 : vector<1x8x1xf32> to vector<8x1xf32>
    %cst_115 = arith.constant 0.000000e+00 : f32
    %209 = vector.broadcast %cst_115 : f32 to vector<8x128xf32>
    %210 = arith.cmpf oge, %206, %209 : vector<8x128xf32>
    %211 = vector.broadcast %208 : vector<8x1xf32> to vector<8x128xf32>
    %212 = arith.mulf %211, %206 : vector<8x128xf32>
    %213 = arith.select %210, %206, %212 : vector<8x128xi1>, vector<8x128xf32>
    %c0_116 = arith.constant 0 : index
    %c0_117 = arith.constant 0 : index
    %214 = vector.load %arg11[%c0_116, %c0_117] : memref<8x8xf32, #tpu.memory_space<vmem>>, vector<8x8xf32>
    %c0_118 = arith.constant 0 : index
    %c0_119 = arith.constant 0 : index
    %215 = vector.load %arg12[%c0_118, %c0_119] : memref<8x1xf32, #tpu.memory_space<vmem>>, vector<8x1xf32>
    %cst_120 = arith.constant dense<0.000000e+00> : vector<8x128xf32>
    %216 = tpu.matmul %214, %213, %cst_120 {dimension_numbers = #tpu.dot_dimension_numbers<[1], [0], [0], [1], [0, 0, 1, 1], [], []>} : vector<8x8xf32>, vector<8x128xf32>, vector<8x128xf32> -> vector<8x128xf32>
    %217 = vector.broadcast %215 : vector<8x1xf32> to vector<8x128xf32>
    %218 = arith.addf %216, %217 : vector<8x128xf32>
    %c0_121 = arith.constant 0 : index
    %c0_122 = arith.constant 0 : index
    %219 = vector.load %arg13[%c0_121, %c0_122] : memref<8x128xf32, #tpu.memory_space<vmem>>, vector<8x128xf32>
    tpu.vector_store %arg13[%c0_121, %c0_122], %218 {strides = array<i32>} : memref<8x128xf32, #tpu.memory_space<vmem>>, vector<8x128xf32>,
    return
  }
  func.func @transform_0(%arg0: i32) -> (i32, i32) {
    %c0_i32 = arith.constant 0 : i32
    %c0_i32_0 = arith.constant 0 : i32
    %c0_i32_1 = arith.constant 0 : i32
    return %c0_i32, %c0_i32_0 : i32, i32
  }
  func.func @transform_1(%arg0: i32) -> (i32, i32) {
    %c0_i32 = arith.constant 0 : i32
    %c0_i32_0 = arith.constant 0 : i32
    %c0_i32_1 = arith.constant 0 : i32
    return %c0_i32, %c0_i32_0 : i32, i32
  }
  func.func @transform_2(%arg0: i32) -> (i32, i32) {
    %c0_i32 = arith.constant 0 : i32
    %c0_i32_0 = arith.constant 0 : i32
    %c0_i32_1 = arith.constant 0 : i32
    return %c0_i32, %c0_i32_0 : i32, i32
  }
  func.func @transform_3(%arg0: i32) -> (i32, i32, i32) {
    %c0_i32 = arith.constant 0 : i32
    %c0_i32_0 = arith.constant 0 : i32
    %c0_i32_1 = arith.constant 0 : i32
    %c0_i32_2 = arith.constant 0 : i32
    return %c0_i32, %c0_i32_0, %c0_i32_1 : i32, i32, i32
  }
  func.func @transform_4(%arg0: i32) -> (i32, i32, i32) {
    %c0_i32 = arith.constant 0 : i32
    %c0_i32_0 = arith.constant 0 : i32
    %c0_i32_1 = arith.constant 0 : i32
    %c0_i32_2 = arith.constant 0 : i32
    return %c0_i32, %c0_i32_0, %c0_i32_1 : i32, i32, i32
  }
  func.func @transform_5(%arg0: i32) -> (i32, i32, i32) {
    %c0_i32 = arith.constant 0 : i32
    %c0_i32_0 = arith.constant 0 : i32
    %c0_i32_1 = arith.constant 0 : i32
    %c0_i32_2 = arith.constant 0 : i32
    return %c0_i32, %c0_i32_0, %c0_i32_1 : i32, i32, i32
  }
  func.func @transform_6(%arg0: i32) -> (i32, i32, i32) {
    %c0_i32 = arith.constant 0 : i32
    %c0_i32_0 = arith.constant 0 : i32
    %c0_i32_1 = arith.constant 0 : i32
    %c0_i32_2 = arith.constant 0 : i32
    return %c0_i32, %c0_i32_0, %c0_i32_1 : i32, i32, i32
  }
  func.func @transform_7(%arg0: i32) -> (i32, i32, i32) {
    %c0_i32 = arith.constant 0 : i32
    %c0_i32_0 = arith.constant 0 : i32
    %c0_i32_1 = arith.constant 0 : i32
    %c0_i32_2 = arith.constant 0 : i32
    return %c0_i32, %c0_i32_0, %c0_i32_1 : i32, i32, i32
  }
  func.func @transform_8(%arg0: i32) -> (i32, i32) {
    %c0_i32 = arith.constant 0 : i32
    %c0_i32_0 = arith.constant 0 : i32
    %c0_i32_1 = arith.constant 0 : i32
    return %c0_i32, %c0_i32_0 : i32, i32
  }
  func.func @transform_9(%arg0: i32) -> (i32, i32) {
    %c0_i32 = arith.constant 0 : i32
    %c0_i32_0 = arith.constant 0 : i32
    %c0_i32_1 = arith.constant 0 : i32
    return %c0_i32, %c0_i32_0 : i32, i32
  }
  func.func @transform_10(%arg0: i32) -> (i32, i32) {
    %c0_i32 = arith.constant 0 : i32
    %c0_i32_0 = arith.constant 0 : i32
    %c0_i32_1 = arith.constant 0 : i32
    return %c0_i32, %c0_i32_0 : i32, i32
  }
  func.func @transform_11(%arg0: i32) -> (i32, i32) {
    %c0_i32 = arith.constant 0 : i32
    %c0_i32_0 = arith.constant 0 : i32
    %c0_i32_1 = arith.constant 0 : i32
    return %c0_i32, %c0_i32_0 : i32, i32
  }
  func.func @transform_12(%arg0: i32) -> (i32, i32) {
    %c0_i32 = arith.constant 0 : i32
    %c0_i32_0 = arith.constant 0 : i32
    return %c0_i32, %arg0 : i32, i32
  }
}

</mosaic_0001>

<bundles_post_ra>
// kernel: tpu_custom_call.1
= control target key start
LH: loop header
LB: loop body
LE: loop exit
PB: predicated region body
PF: predicated region fallthrough
CT: control target
= control target key end

     0   :  { %s2728_s0 = inlined_call_operand.vmem [shape: f32[1,640], index: 0, kind: input, shape index: {}]   ;;  %s2729_s1 = inlined_call_operand.vmem [shape: f32[8,1], index: 1, kind: input, shape index: {}]   ;;  %s2730_s2 = inlined_call_operand.vmem [shape: f32[8,1], index: 2, kind: input, shape index: {}]   ;;  %s2731_s3 = inlined_call_operand.vmem [shape: f32[6,16,16], index: 3, kind: input, shape index: {}]   ;;  %s2732_s4 = inlined_call_operand.vmem [shape: f32[6,16,1], index: 4, kind: input, shape index: {}]   ;;  %s2733_s5 = inlined_call_operand.vmem [shape: f32[6,16,8], index: 5, kind: input, shape index: {}]   ;;  %s2734_s6 = inlined_call_operand.vmem [shape: f32[6,16,1], index: 6, kind: input, shape index: {}]   ;;  %s2735_s7 = inlined_call_operand.vmem [shape: f32[2,8,1], index: 7, kind: input, shape index: {}]   ;;  %s2736_s8 = inlined_call_operand.vmem [shape: f32[8,8], index: 8, kind: input, shape index: {}]   ;;  %s2737_s9 = inlined_call_operand.vmem [shape: f32[8,1], index: 9, kind: input, shape index: {}]   ;;  %s2738_s10 = inlined_call_operand.vmem [shape: f32[8,8], index: 10, kind: input, shape index: {}]   ;;  %s2739_s11 = inlined_call_operand.vmem [shape: f32[8,1], index: 11, kind: input, shape index: {}]   ;;  %s2740_s12 = inlined_call_operand.hbm [shape: f32[8,512], index: 12, kind: output, shape index: {}]  }
   0x1   :  { %2742 = sst [smem:[#allocation5_spill]] %s2728_s0 }
   0x2   :  { %2743 = sst [smem:[#allocation6_spill]] %s2729_s1 }
   0x3   :  { %17 = vsyncpa [#allocation3], 0 }
   0x4   :  { %19 = vsyncpa [#allocation3 + $0x1], 0  ;;  %s2364_s21 = smov 0   ;;  %s2366_s22 = smov 0  }
   0x5   :  { %s2368_s23 = smov 0   ;;  %s2370_s24 = smov 0  }
   0x6 LB: > { %s1970_s25 = sadd.s32 4294967295, %s2290_s24   ;;  %s1971_s26 = sadd.s32 4294967294, %s2290_s24   ;;  %s2290_s24 = sphi %s2370_s24, %s2752_s24   ;;  %s2286_s23 = sphi %s2368_s23, %s2751_s23   ;;  %s2282_s22 = sphi %s2366_s22, %s2750_s22   ;;  %s2278_s21 = sphi %s2364_s21, %s2749_s21  }
   0x7   : > { %s2387_s27 = sadd.s32 1, %s2290_s24   ;;  %s284_s28 = sadd.s32 1, %s2286_s23 }
   0x8   : > { %s281_s29 = ssub.s32 %s2290_s24, %s2387_s27  ;;  %p294_p0 = scmp.ne.s32.totalorder %s2286_s23, %s2282_s22 }
   0x9   : > { %p282_p1 = scmp.eq.s32.totalorder %s281_s29, 0  ;;  %p295_p2 = scmp.eq.s32.totalorder %s1970_s25, 3 }
   0xa   : > { %p300_p3 = scmp.ne.s32.totalorder %s2282_s22, %s2278_s21  ;;  %p301_p4 = scmp.eq.s32.totalorder %s1971_s26, 3 }
   0xb   : > { %s2397_s30 = scalar_select %p282_p1, %s2286_s23, %s284_s28  }
   0xc   : > { %p2399_p5 = por %p295_p2, %p294_p0  ;;  %p2403_p6 = por %p301_p4, %p300_p3 }
   0xd   : > { %p1973_p7 = scmp.ge.s32.totalorder %s2290_s24, 1  ;;  %p355_p8 = scmp.lt.s32.totalorder %s2290_s24, 5 }
   0xf   : > { %p356_p9 = pnand %p1973_p7, %p355_p8 }
  0x10   : > { %s2746_s1 = sld [smem:[#allocation6_spill]] (!%p356_p9)  ;;  %v2292_v1 = vmov (!%p356_p9), 0   ;;  %v416_v2 = vld [vmem:[%s2730_s2] sm:$0xff] (!%p356_p9)  ;;  %v404_v4 = vlaneseq (!%p356_p9)  ;;  %s2418_s26 = sshll.u32 (!%p356_p9), %s1970_s25, 7  ;;  %v2293_v14 = vmov (!%p356_p9), 0.0   ;;  %v436_v19 = vld [vmem:[%s2732_s4 + $0x8] sm:$0xff] (!%p356_p9) }
  0x11   : > { %359 = sbr.rel (%p356_p9) target bundleno = 4107 (0x100b), region = 68  ;;  %2148 = vset.pattern.permute.xlu0 (!%p356_p9), %v2292_v1  ;;  %2154 = vset.pattern.permute.xlu1 (!%p356_p9), %v2292_v1  ;;  %v435_v3 = vld [vmem:[%s2732_s4] sm:$0xff] (!%p356_p9)  ;;  %s393_s28 = sshra.s32 (!%p356_p9), %s2418_s26, 7  ;;  %v1983_v21 = vld [vmem:[%s2732_s4 + $0x18] sm:$0xff] (!%p356_p9)  ;;  %v1988_v22 = vld [vmem:[%s2734_s6 + $0x10] sm:$0xff] (!%p356_p9)  ;;  %vm447_vm1 = vcmask (!%p356_p9), 130048  }
  0x12   : > { %v405_v5 = vshrl.u32 (!%p356_p9), %v404_v4, 7  ;;  %s2747_s0 = sld [smem:[#allocation5_spill]] (!%p356_p9)  ;;  %518 = vmatprep.mubr.f32.mxu0 (!%p356_p9), %v2293_v14  ;;  %634 = vmatprep.mubr.f32.mxu1 (!%p356_p9), %v2293_v14  ;;  %s2741_s25 = smov (!%p356_p9), 1   ;;  %v545_v20 = vld [vmem:[%s2734_s6] sm:$0xff] (!%p356_p9)  ;;  %v1995_v23 = vld [vmem:[%s2732_s4 + $0x28] sm:$0xff] (!%p356_p9)  ;;  %v2007_v25 = vld [vmem:[%s2732_s4 + $0x38] sm:$0xff] (!%p356_p9) }
  0x13   : > { %v2000_v24 = vld [vmem:[%s2734_s6 + $0x20] sm:$0xff] (!%p356_p9)  ;;  %v2012_v26 = vld [vmem:[%s2734_s6 + $0x30] sm:$0xff] (!%p356_p9)  ;;  %v2019_v27 = vld [vmem:[%s2732_s4 + $0x48] sm:$0xff] (!%p356_p9)  ;;  %v2481_v35 = vand.u32 (!%p356_p9), 127, %v404_v4  ;;  %vm557_vm2 = vcmask (!%p356_p9), 64512   ;;  %s2295_s17 = smov (!%p356_p9), 2  }
  0x14   : > { %v406_v6 = vsub.s32 (!%p356_p9), 0, %v405_v5  ;;  %v410_v7 = vsub.s32 (!%p356_p9), 1, %v405_v5  ;;  %v2024_v28 = vld [vmem:[%s2734_s6 + $0x40] sm:$0xff] (!%p356_p9)  ;;  %v2031_v29 = vld [vmem:[%s2732_s4 + $0x58] sm:$0xff] (!%p356_p9)  ;;  %v546_v30 = vld [vmem:[%s2734_s6 + $0x8] sm:$0xff] (!%p356_p9)  ;;  %s2748_s20 = smov (!%p356_p9), 1  }
  0x15   : > { %v2001_v31 = vld [vmem:[%s2734_s6 + $0x28] sm:$0xff] (!%p356_p9)  ;;  %v1729_v33 = vld [vmem:[%s2735_s7] sm:$0xff] (!%p356_p9)  ;;  %vm430_vm0 = vcmp.lt.s32.totalorder (!%p356_p9), %v2481_v35, 1  ;;  %vm646_vm3 = vcmp.lt.s32.totalorder (!%p356_p9), %v2481_v35, 2  ;;  %vm865_vm4 = vcmp.lt.s32.totalorder (!%p356_p9), %v2481_v35, 4  ;;  %vm2297_vm5 = vmmov (!%p356_p9), 0  }
  0x16   : > { %v397_v0 = vld [vmem:[%s2746_s1] sm:$0xff] (!%p356_p9)  ;;  %v2025_v32 = vld [vmem:[%s2734_s6 + $0x48] sm:$0xff] (!%p356_p9) }
  0x17   : > { %400 = vperm.xlu0 (!%p356_p9), %2148, %v397_v0   ;;  %v2041_v34 = vld [vmem:[%s2735_s7 + $0x8] sm:$0xff] (!%p356_p9)  ;;  %v433_v43 = vld [vmem:[%s2731_s3] sm:$0xff] (!%p356_p9) }
  0x18   : > { %s395_s16 = scalar_lea.vmem %s2747_s0, %s393_s28  ;;  %v434_v44 = vld [vmem:[%s2731_s3 + $0x8] sm:$0xff]  ;;  %s389_s28 = sand.u32 1, %s2282_s22  }
  0x19   : > { %v396_v8 = vld [vmem:[%s395_s16] sm:$0x3]  ;;  %v544_v4 = vld [vmem:[%s2733_s5 + $0x8] sm:$0xff]  ;;  %s1974_s29 = sshll.u32 %s389_s28, 3  ;;  %s1910_s18 = scalar_lea.sflag [#allocation3], %s389_s28 }
  0x1a   : > { %v407_v9 = vrot.slane %v396_v8, %v406_v6  ;;  %v411_v10 = vrot.slane %v396_v8, %v410_v7  ;;  %v2023_v35 = vld [vmem:[%s2733_s5 + $0x48] sm:$0xff] }
  0x1b   : > { %419 = vperm.xlu0 %2148, %v416_v2  }
  0x1f   : > { %439 = vperm.xlu0 %2148, %v435_v3   ;;  %v543_v3 = vld [vmem:[%s2733_s5] sm:$0xff] }
  0x96   : > { %v401_v11 = vpop.permute.xlu0 %400 }
  0x97   : > { %v414_v12 = vmul.f32 %v407_v9, %v401_v11  ;;  %v415_v13 = vmul.f32 %v411_v10, %v401_v11 }
  0x9a   : > { %v420_v15 = vpop.permute.xlu0 %419 }
  0x9b   : > { %v2426_v16 = vadd.f32 %v420_v15, %v414_v12  ;;  %v2428_v17 = vadd.f32 %v420_v15, %v415_v13  ;;  %v1982_v13 = vld [vmem:[%s2732_s4 + $0x10] sm:$0xff] }
  0x9d   : > { %v2149_v18 = vpack.i.bf16 %v2428_v17, %v2426_v16 }
  0x9e   : > { %v440_v53 = vpop.permute.xlu0 %439 }
  0x9f   : > { %2150 = vrot.lane.b32.xlu1 %v2149_v18, %s2741_s25  ;;  %s2296_s25 = smov 4  }
  0xa3   : > { %444 = vperm.xlu1 %2154, %v436_v19  }
  0xa7   : > { %549 = vperm.xlu1 %2154, %v545_v20  }
  0xab   : > { %662 = vperm.xlu1 %2154, %v1983_v21  }
  0xaf   : > { %768 = vperm.xlu1 %2154, %v1988_v22   ;;  %v1980_v22 = vld [vmem:[%s2731_s3 + $0x10] sm:$0xff] }
  0xb3   : > { %881 = vperm.xlu1 %2154, %v1995_v23   ;;  %v1981_v23 = vld [vmem:[%s2731_s3 + $0x18] sm:$0xff] }
  0xb7   : > { %987 = vperm.xlu1 %2154, %v2000_v24  }
  0xbb   : > { %1099 = vperm.xlu1 %2154, %v2007_v25  }
  0xbf   : > { %1205 = vperm.xlu1 %2154, %v2012_v26  }
  0xc3   : > { %1317 = vperm.xlu1 %2154, %v2019_v27  }
  0xc7   : > { %1423 = vperm.xlu1 %2154, %v2024_v28  }
  0xcb   : > { %1535 = vperm.xlu1 %2154, %v2031_v29  }
  0xcf   : > { %554 = vperm.xlu1 %2154, %v546_v30  }
  0xd3   : > { %992 = vperm.xlu1 %2154, %v2001_v31  }
  0xd7   : > { %1428 = vperm.xlu1 %2154, %v2025_v32  }
  0xdb   : > { %1733 = vperm.xlu1 %2154, %v1729_v33  }
  0xdf   : > { %1823 = vperm.xlu1 %2154, %v2041_v34  }
 0x111   : > { %v2151_v36 = vpop.permute.xlu1 %2150 }
 0x112   : > { %v2153_v37 = vunpack.i.h.bf16 %v2151_v36  ;;  %v2152_v38 = vunpack.i.l.bf16 %v2151_v36 }
 0x114   : > { %v431_v39 = vsel %vm430_vm0, %v2152_v38, %v2153_v37  ;;  %v432_v40 = vsel %vm430_vm0, %v2153_v37, %v2152_v38 }
 0x115   : > { %v2061_v41 = vpack.c.bf16 %v2428_v17, %v431_v39  ;;  %v2063_v42 = vpack.c.bf16 %v2426_v16, %v432_v40 }
 0x117   : > { %2062 = vmatprep.subr.bf16.mxu0 %v2061_v41 }
 0x118   : > { %2064 = vmatpush1.bf16.msra.mxu0 %v2063_v42 }
 0x11b   : > { %1976 = vmatmul.mubr.msk.f32.vlgmr.msra.gmra.mrb[0].mxu0 %vm447_vm1, %v433_v43 }
 0x11c   : > { %524 = vmatprep.mubr.f32.mxu0 %v2293_v14 }
 0x11f   : > { %1977 = vmatmul.mubr.msk.f32.gmra.mrb[2].mxu0 %vm447_vm1, %v434_v44 }
 0x120   : > { %628 = vmatprep.mubr.f32.mxu0 %v2293_v14 }
 0x122   : > { %v445_v47 = vpop.permute.xlu1 %444 }
 0x126   : > { %v550_v5 = vpop.permute.xlu1 %549 }
 0x12a   : > { %v663_v26 = vpop.permute.xlu1 %662 }
 0x1ee   : > { %v520_v45 = vpop.f32.mrb[0].mxu0 }
 0x1ef   : > { %v522_v46 = vpop.f32.mrb[1].mxu0  ;;  %v521_v55 = vadd.f32 %v520_v45, %v440_v53 }
 0x1f0   : > { %v523_v56 = vadd.f32 %v522_v46, %v440_v53 }
 0x1f2   : > { %v526_v48 = vpop.f32.mrb[2].mxu0 }
 0x1f3   : > { %v527_v49 = vadd.f32 %v526_v48, %v445_v47  ;;  %v528_v50 = vpop.f32.mrb[3].mxu0  ;;  %v769_v48 = vpop.permute.xlu1 %768 }
 0x1f4   : > { %v529_v51 = vadd.f32 %v528_v50, %v445_v47  ;;  %v1986_v47 = vld [vmem:[%s2733_s5 + $0x10] sm:$0xff] }
 0x1f5   : > { %v533_v52 = vmul.f32 0.5, %v527_v49 }
 0x1f6   : > { %v534_v54 = vmul.f32 0.5, %v529_v51 }
 0x1f7   : > { %2180 = vtanh.f32 %v533_v52 }
 0x1f8   : > { %2182 = vtanh.f32 %v534_v54 }
 0x1f9   : > { %2184 = vtanh.f32 %v521_v55 }
 0x1fa   : > { %2186 = vtanh.f32 %v523_v56  ;;  %v1994_v56 = vld [vmem:[%s2732_s4 + $0x20] sm:$0xff] }
 0x201   : > { %v2181_v57 = vpop.eup %2180 }
 0x202   : > { %v2183_v58 = vpop.eup %2182  ;;  %v537_v59 = vmul.f32 0.5, %v2181_v57 }
 0x203   : > { %v538_v60 = vmul.f32 0.5, %v2183_v58  ;;  %v2185_v62 = vpop.eup %2184 }
 0x204   : > { %v539_v61 = vadd.f32 0.5, %v537_v59  ;;  %v2187_v0 = vpop.eup %2186 }
 0x205   : > { %v540_v63 = vadd.f32 0.5, %v538_v60 }
 0x206   : > { %v541_v1 = vmul.f32 %v2185_v62, %v539_v61 }
 0x207   : > { %v542_v2 = vmul.f32 %v2187_v0, %v540_v63  ;;  %v1992_v0 = vld [vmem:[%s2731_s3 + $0x20] sm:$0xff] }
 0x209   : > { %564 = vmatprep.subr.mxu0 %v542_v2  ;;  %2085 = vmatprep.subr.mxu1 %v542_v2  ;;  %v1987_v2 = vld [vmem:[%s2733_s5 + $0x18] sm:$0xff] }
 0x20a   : > { %565 = vmatpush1.msra.mxu0 %v541_v1  ;;  %2086 = vmatpush1.msra.mxu1 %v541_v1  ;;  %v1993_v1 = vld [vmem:[%s2731_s3 + $0x28] sm:$0xff] }
 0x20b   : > { %1978 = vmatmul.mubr.msk.f32.vlgmr.msra.gmra.mrb[4].mxu0 %vm557_vm2, %v543_v3  ;;  %1979 = vmatmul.mubr.msk.f32.vlgmr.msra.gmra.mrb[0].mxu1 %vm557_vm2, %v544_v4 }
 0x20c   : > { %954 = vmatprep.mubr.f32.mxu0 %v2293_v14  ;;  %735 = vmatprep.mubr.f32.mxu1 %v2293_v14 }
 0x2de   : > { %v630_v6 = vpop.f32.mrb[4].mxu0 }
 0x2df   : > { %v631_v7 = vadd.f32 %v630_v6, %v550_v5  ;;  %v632_v8 = vpop.f32.mrb[5].mxu0 }
 0x2e0   : > { %v633_v9 = vadd.f32 %v632_v8, %v550_v5  ;;  %v882_v5 = vpop.permute.xlu1 %881 }
 0x2e1   : > { %v640_v10 = vadd.f32 %v631_v7, %v2426_v16 }
 0x2e2   : > { %v641_v11 = vadd.f32 %v633_v9, %v2428_v17 }
 0x2e4   : > { %v2155_v12 = vpack.i.bf16 %v641_v11, %v640_v10 }
 0x2e6   : > { %2156 = vrot.lane.b32.xlu0 %v2155_v12, %s2295_s17 }
 0x2ea   : > { %657 = vperm.xlu0 %2148, %v1982_v13  }
 0x358   : > { %v2157_v15 = vpop.permute.xlu0 %2156 }
 0x359   : > { %v2159_v18 = vunpack.i.h.bf16 %v2157_v15  ;;  %v2158_v19 = vunpack.i.l.bf16 %v2157_v15 }
 0x35b   : > { %v648_v20 = vsel %vm646_vm3, %v2159_v18, %v2158_v19  ;;  %v647_v16 = vsel %vm646_vm3, %v2158_v19, %v2159_v18 }
 0x35c   : > { %v2067_v17 = vpack.c.bf16 %v640_v10, %v648_v20  ;;  %v2065_v21 = vpack.c.bf16 %v641_v11, %v647_v16 }
 0x35e   : > { %2066 = vmatprep.subr.bf16.mxu1 %v2065_v21 }
 0x35f   : > { %2068 = vmatpush1.bf16.msra.mxu1 %v2067_v17 }
 0x362   : > { %1984 = vmatmul.mubr.msk.f32.vlgmr.msra.gmra.mrb[2].mxu1 %vm447_vm1, %v1980_v22 }
 0x363   : > { %741 = vmatprep.mubr.f32.mxu1 %v2293_v14 }
 0x366   : > { %1985 = vmatmul.mubr.msk.f32.gmra.mrb[4].mxu1 %vm447_vm1, %v1981_v23 }
 0x367   : > { %846 = vmatprep.mubr.f32.mxu1 %v2293_v14 }
 0x369   : > { %v658_v32 = vpop.permute.xlu0 %657 }
 0x435   : > { %v737_v24 = vpop.f32.mrb[2].mxu1 }
 0x436   : > { %v739_v25 = vpop.f32.mrb[3].mxu1  ;;  %v738_v34 = vadd.f32 %v737_v24, %v658_v32 }
 0x437   : > { %v740_v36 = vadd.f32 %v739_v25, %v658_v32 }
 0x439   : > { %v743_v27 = vpop.f32.mrb[4].mxu1 }
 0x43a   : > { %v744_v28 = vadd.f32 %v743_v27, %v663_v26  ;;  %v745_v29 = vpop.f32.mrb[5].mxu1  ;;  %v988_v27 = vpop.permute.xlu1 %987 }
 0x43b   : > { %v746_v30 = vadd.f32 %v745_v29, %v663_v26  ;;  %v1998_v26 = vld [vmem:[%s2733_s5 + $0x20] sm:$0xff] }
 0x43c   : > { %v750_v31 = vmul.f32 0.5, %v744_v28 }
 0x43d   : > { %v751_v33 = vmul.f32 0.5, %v746_v30 }
 0x43e   : > { %2188 = vtanh.f32 %v750_v31 }
 0x43f   : > { %2190 = vtanh.f32 %v751_v33 }
 0x440   : > { %2192 = vtanh.f32 %v738_v34 }
 0x441   : > { %2194 = vtanh.f32 %v740_v36  ;;  %v2006_v36 = vld [vmem:[%s2732_s4 + $0x30] sm:$0xff] }
 0x448   : > { %v2189_v37 = vpop.eup %2188 }
 0x449   : > { %v2191_v38 = vpop.eup %2190  ;;  %v754_v39 = vmul.f32 0.5, %v2189_v37 }
 0x44a   : > { %v755_v40 = vmul.f32 0.5, %v2191_v38  ;;  %v2193_v42 = vpop.eup %2192 }
 0x44b   : > { %v756_v41 = vadd.f32 0.5, %v754_v39  ;;  %v2195_v44 = vpop.eup %2194 }
 0x44c   : > { %v757_v43 = vadd.f32 0.5, %v755_v40 }
 0x44d   : > { %v758_v45 = vmul.f32 %v2193_v42, %v756_v41 }
 0x44e   : > { %v759_v46 = vmul.f32 %v2195_v44, %v757_v43  ;;  %v2004_v44 = vld [vmem:[%s2731_s3 + $0x30] sm:$0xff] }
 0x450   : > { %782 = vmatprep.subr.mxu1 %v759_v46  ;;  %v1999_v46 = vld [vmem:[%s2733_s5 + $0x28] sm:$0xff] }
 0x451   : > { %783 = vmatpush1.msra.mxu1 %v758_v45  ;;  %v2005_v45 = vld [vmem:[%s2731_s3 + $0x38] sm:$0xff] }
 0x452   : > { %1990 = vmatmul.mubr.msk.f32.vlgmr.msra.gmra.mrb[6].mxu1 %vm557_vm2, %v1986_v47 }
 0x453   : > { %852 = vmatprep.mubr.f32.mxu1 %v2293_v14 }
 0x456   : > { %1991 = vmatmul.mubr.msk.f32.gmra.mrb[0].mxu1 %vm557_vm2, %v1987_v2 }
 0x457   : > { %1065 = vmatprep.mubr.f32.mxu1 %v2293_v14 }
 0x525   : > { %v848_v49 = vpop.f32.mrb[6].mxu1 }
 0x526   : > { %v849_v50 = vadd.f32 %v848_v49, %v769_v48  ;;  %v850_v51 = vpop.f32.mrb[7].mxu1  ;;  %v1100_v49 = vpop.permute.xlu1 %1099 }
 0x527   : > { %v851_v52 = vadd.f32 %v850_v51, %v769_v48 }
 0x528   : > { %v858_v53 = vadd.f32 %v849_v50, %v640_v10 }
 0x529   : > { %v859_v54 = vadd.f32 %v851_v52, %v641_v11 }
 0x52b   : > { %v2160_v55 = vpack.i.bf16 %v859_v54, %v858_v53 }
 0x52d   : > { %2161 = vrot.lane.b32.xlu0 %v2160_v55, %s2296_s25 }
 0x531   : > { %876 = vperm.xlu0 %2148, %v1994_v56  }
 0x59f   : > { %v2162_v57 = vpop.permute.xlu0 %2161 }
 0x5a0   : > { %v2164_v58 = vunpack.i.h.bf16 %v2162_v57  ;;  %v2163_v59 = vunpack.i.l.bf16 %v2162_v57 }
 0x5a2   : > { %v867_v60 = vsel %vm865_vm4, %v2164_v58, %v2163_v59  ;;  %v866_v61 = vsel %vm865_vm4, %v2163_v59, %v2164_v58 }
 0x5a3   : > { %v2071_v62 = vpack.c.bf16 %v858_v53, %v867_v60  ;;  %v2069_v63 = vpack.c.bf16 %v859_v54, %v866_v61 }
 0x5a5   : > { %2070 = vmatprep.subr.bf16.mxu0 %v2069_v63 }
 0x5a6   : > { %2072 = vmatpush1.bf16.msra.mxu0 %v2071_v62 }
 0x5a9   : > { %1996 = vmatmul.mubr.msk.f32.vlgmr.msra.gmra.mrb[6].mxu0 %vm447_vm1, %v1992_v0 }
 0x5aa   : > { %960 = vmatprep.mubr.f32.mxu0 %v2293_v14 }
 0x5ad   : > { %1997 = vmatmul.mubr.msk.f32.gmra.mrb[8].mxu0 %vm447_vm1, %v1993_v1 }
 0x5ae   : > { %1172 = vmatprep.mubr.f32.mxu0 %v2293_v14 }
 0x5b0   : > { %v877_v11 = vpop.permute.xlu0 %876 }
 0x67c   : > { %v956_v3 = vpop.f32.mrb[6].mxu0 }
 0x67d   : > { %v958_v4 = vpop.f32.mrb[7].mxu0  ;;  %v957_v13 = vadd.f32 %v956_v3, %v877_v11 }
 0x67e   : > { %v959_v15 = vadd.f32 %v958_v4, %v877_v11 }
 0x680   : > { %v962_v6 = vpop.f32.mrb[8].mxu0 }
 0x681   : > { %v963_v7 = vadd.f32 %v962_v6, %v882_v5  ;;  %v964_v8 = vpop.f32.mrb[9].mxu0  ;;  %v1206_v6 = vpop.permute.xlu1 %1205 }
 0x682   : > { %v965_v9 = vadd.f32 %v964_v8, %v882_v5  ;;  %v2010_v5 = vld [vmem:[%s2733_s5 + $0x30] sm:$0xff] }
 0x683   : > { %v969_v10 = vmul.f32 0.5, %v963_v7 }
 0x684   : > { %v970_v12 = vmul.f32 0.5, %v965_v9 }
 0x685   : > { %2196 = vtanh.f32 %v969_v10 }
 0x686   : > { %2198 = vtanh.f32 %v970_v12 }
 0x687   : > { %2200 = vtanh.f32 %v957_v13 }
 0x688   : > { %2202 = vtanh.f32 %v959_v15  ;;  %v2018_v15 = vld [vmem:[%s2732_s4 + $0x40] sm:$0xff] }
 0x68f   : > { %v2197_v18 = vpop.eup %2196 }
 0x690   : > { %v2199_v19 = vpop.eup %2198  ;;  %v973_v20 = vmul.f32 0.5, %v2197_v18 }
 0x691   : > { %v974_v16 = vmul.f32 0.5, %v2199_v19  ;;  %v2201_v21 = vpop.eup %2200 }
 0x692   : > { %v975_v17 = vadd.f32 0.5, %v973_v20  ;;  %v2203_v23 = vpop.eup %2202 }
 0x693   : > { %v976_v22 = vadd.f32 0.5, %v974_v16 }
 0x694   : > { %v977_v24 = vmul.f32 %v2201_v21, %v975_v17 }
 0x695   : > { %v978_v25 = vmul.f32 %v2203_v23, %v976_v22  ;;  %v2016_v23 = vld [vmem:[%s2731_s3 + $0x40] sm:$0xff] }
 0x697   : > { %1001 = vmatprep.subr.mxu1 %v978_v25  ;;  %v2011_v25 = vld [vmem:[%s2733_s5 + $0x38] sm:$0xff] }
 0x698   : > { %1002 = vmatpush1.msra.mxu1 %v977_v24  ;;  %v2017_v24 = vld [vmem:[%s2731_s3 + $0x48] sm:$0xff] }
 0x699   : > { %2002 = vmatmul.mubr.msk.f32.vlgmr.msra.gmra.mrb[8].mxu1 %vm557_vm2, %v1998_v26 }
 0x69a   : > { %1071 = vmatprep.mubr.f32.mxu1 %v2293_v14 }
 0x69d   : > { %2003 = vmatmul.mubr.msk.f32.gmra.mrb[0].mxu1 %vm557_vm2, %v1999_v46 }
 0x69e   : > { %1283 = vmatprep.mubr.f32.mxu1 %v2293_v14 }
 0x76c   : > { %v1067_v28 = vpop.f32.mrb[8].mxu1 }
 0x76d   : > { %v1068_v29 = vadd.f32 %v1067_v28, %v988_v27  ;;  %v1069_v30 = vpop.f32.mrb[9].mxu1  ;;  %v1318_v28 = vpop.permute.xlu1 %1317 }
 0x76e   : > { %v1070_v31 = vadd.f32 %v1069_v30, %v988_v27 }
 0x76f   : > { %v1077_v32 = vadd.f32 %v1068_v29, %v858_v53 }
 0x770   : > { %v1078_v33 = vadd.f32 %v1070_v31, %v859_v54 }
 0x772   : > { %v2165_v34 = vpack.i.bf16 %v1078_v33, %v1077_v32 }
 0x774   : > { %2166 = vrot.lane.b32.xlu0 %v2165_v34, %s2748_s20  ;;  %s2298_s20 = smov [#allocation2]  }
 0x778   : > { %1094 = vperm.xlu0 %2148, %v2006_v36  }
 0x7e6   : > { %v2167_v37 = vpop.permute.xlu0 %2166 }
 0x7e7   : > { %v2169_v38 = vunpack.i.h.bf16 %v2167_v37  ;;  %v2168_v39 = vunpack.i.l.bf16 %v2167_v37 }
 0x7e9   : > { %v1085_v40 = vsel %vm430_vm0, %v2169_v38, %v2168_v39  ;;  %v1084_v41 = vsel %vm430_vm0, %v2168_v39, %v2169_v38 }
 0x7ea   : > { %v2075_v42 = vpack.c.bf16 %v1077_v32, %v1085_v40  ;;  %v2073_v43 = vpack.c.bf16 %v1078_v33, %v1084_v41 }
 0x7ec   : > { %2074 = vmatprep.subr.bf16.mxu0 %v2073_v43 }
 0x7ed   : > { %2076 = vmatpush1.bf16.msra.mxu0 %v2075_v42 }
 0x7f0   : > { %2008 = vmatmul.mubr.msk.f32.vlgmr.msra.gmra.mrb[10].mxu0 %vm447_vm1, %v2004_v44 }
 0x7f1   : > { %1178 = vmatprep.mubr.f32.mxu0 %v2293_v14 }
 0x7f4   : > { %2009 = vmatmul.mubr.msk.f32.gmra.mrb[12].mxu0 %vm447_vm1, %v2005_v45 }
 0x7f5   : > { %1390 = vmatprep.mubr.f32.mxu0 %v2293_v14 }
 0x7f7   : > { %v1095_v55 = vpop.permute.xlu0 %1094 }
 0x8c3   : > { %v1174_v47 = vpop.f32.mrb[10].mxu0 }
 0x8c4   : > { %v1176_v48 = vpop.f32.mrb[11].mxu0  ;;  %v1175_v57 = vadd.f32 %v1174_v47, %v1095_v55 }
 0x8c5   : > { %v1177_v58 = vadd.f32 %v1176_v48, %v1095_v55 }
 0x8c7   : > { %v1180_v50 = vpop.f32.mrb[12].mxu0 }
 0x8c8   : > { %v1181_v51 = vadd.f32 %v1180_v50, %v1100_v49  ;;  %v1182_v52 = vpop.f32.mrb[13].mxu0  ;;  %v1424_v50 = vpop.permute.xlu1 %1423 }
 0x8c9   : > { %v1183_v53 = vadd.f32 %v1182_v52, %v1100_v49  ;;  %v2022_v49 = vld [vmem:[%s2733_s5 + $0x40] sm:$0xff] }
 0x8ca   : > { %v1187_v54 = vmul.f32 0.5, %v1181_v51 }
 0x8cb   : > { %v1188_v56 = vmul.f32 0.5, %v1183_v53 }
 0x8cc   : > { %2204 = vtanh.f32 %v1187_v54 }
 0x8cd   : > { %2206 = vtanh.f32 %v1188_v56 }
 0x8ce   : > { %2208 = vtanh.f32 %v1175_v57 }
 0x8cf   : > { %2210 = vtanh.f32 %v1177_v58  ;;  %v2030_v58 = vld [vmem:[%s2732_s4 + $0x50] sm:$0xff] }
 0x8d6   : > { %v2205_v59 = vpop.eup %2204 }
 0x8d7   : > { %v2207_v60 = vpop.eup %2206  ;;  %v1191_v61 = vmul.f32 0.5, %v2205_v59  ;;  %v1989_v59 = vld [vmem:[%s2734_s6 + $0x18] sm:$0xff] }
 0x8d8   : > { %v1192_v62 = vmul.f32 0.5, %v2207_v60  ;;  %v2209_v0 = vpop.eup %2208  ;;  %v2013_v60 = vld [vmem:[%s2734_s6 + $0x38] sm:$0xff] }
 0x8d9   : > { %v1193_v63 = vadd.f32 0.5, %v1191_v61  ;;  %v2211_v2 = vpop.eup %2210  ;;  %v2037_v61 = vld [vmem:[%s2734_s6 + $0x58] sm:$0xff] }
 0x8da   : > { %v1194_v1 = vadd.f32 0.5, %v1192_v62  ;;  %v1739_v62 = vld [vmem:[%s2737_s9] sm:$0xff] }
 0x8db   : > { %v1195_v3 = vmul.f32 %v2209_v0, %v1193_v63  ;;  %v1829_v63 = vld [vmem:[%s2739_s11] sm:$0xff] }
 0x8dc   : > { %v1196_v4 = vmul.f32 %v2211_v2, %v1194_v1 }
 0x8de   : > { %1219 = vmatprep.subr.mxu1 %v1196_v4 }
 0x8df   : > { %1220 = vmatpush1.msra.mxu1 %v1195_v3 }
 0x8e0   : > { %2014 = vmatmul.mubr.msk.f32.vlgmr.msra.gmra.mrb[10].mxu1 %vm557_vm2, %v2010_v5 }
 0x8e1   : > { %1289 = vmatprep.mubr.f32.mxu1 %v2293_v14 }
 0x8e4   : > { %2015 = vmatmul.mubr.msk.f32.gmra.mrb[0].mxu1 %vm557_vm2, %v2011_v25 }
 0x8e5   : > { %1501 = vmatprep.mubr.f32.mxu1 %v2293_v14 }
 0x9b3   : > { %v1285_v7 = vpop.f32.mrb[10].mxu1 }
 0x9b4   : > { %v1286_v8 = vadd.f32 %v1285_v7, %v1206_v6  ;;  %v1287_v9 = vpop.f32.mrb[11].mxu1  ;;  %v2028_v7 = vld [vmem:[%s2731_s3 + $0x50] sm:$0xff] }
 0x9b5   : > { %v1288_v10 = vadd.f32 %v1287_v9, %v1206_v6 }
 0x9b6   : > { %v1295_v11 = vadd.f32 %v1286_v8, %v1077_v32  ;;  %v2029_v8 = vld [vmem:[%s2731_s3 + $0x58] sm:$0xff] }
 0x9b7   : > { %v1296_v12 = vadd.f32 %v1288_v10, %v1078_v33 }
 0x9b9   : > { %v2170_v13 = vpack.i.bf16 %v1296_v12, %v1295_v11 }
 0x9bb   : > { %2171 = vrot.lane.b32.xlu0 %v2170_v13, %s2295_s17  ;;  %s2686_s17 = scalar_lea.hbm %s2740_s12, %s2418_s26 }
 0x9bf   : > { %1312 = vperm.xlu0 %2148, %v2018_v15  }
 0xa2d   : > { %v2172_v18 = vpop.permute.xlu0 %2171 }
 0xa2e   : > { %v2174_v19 = vunpack.i.h.bf16 %v2172_v18  ;;  %v2173_v20 = vunpack.i.l.bf16 %v2172_v18 }
 0xa30   : > { %v1303_v16 = vsel %vm646_vm3, %v2174_v19, %v2173_v20  ;;  %v1302_v17 = vsel %vm646_vm3, %v2173_v20, %v2174_v19 }
 0xa31   : > { %v2079_v21 = vpack.c.bf16 %v1295_v11, %v1303_v16  ;;  %v2077_v22 = vpack.c.bf16 %v1296_v12, %v1302_v17 }
 0xa33   : > { %2078 = vmatprep.subr.bf16.mxu0 %v2077_v22 }
 0xa34   : > { %2080 = vmatpush1.bf16.msra.mxu0 %v2079_v21 }
 0xa37   : > { %2020 = vmatmul.mubr.msk.f32.vlgmr.msra.gmra.mrb[14].mxu0 %vm447_vm1, %v2016_v23 }
 0xa38   : > { %1396 = vmatprep.mubr.f32.mxu0 %v2293_v14 }
 0xa3b   : > { %2021 = vmatmul.mubr.msk.f32.gmra.mrb[16].mxu0 %vm447_vm1, %v2017_v24 }
 0xa3c   : > { %1608 = vmatprep.mubr.f32.mxu0 %v2293_v14 }
 0xa3e   : > { %v1313_v34 = vpop.permute.xlu0 %1312 }
 0xb0a   : > { %v1392_v26 = vpop.f32.mrb[14].mxu0 }
 0xb0b   : > { %v1394_v27 = vpop.f32.mrb[15].mxu0  ;;  %v1393_v37 = vadd.f32 %v1392_v26, %v1313_v34 }
 0xb0c   : > { %v1395_v38 = vadd.f32 %v1394_v27, %v1313_v34 }
 0xb0e   : > { %v1398_v29 = vpop.f32.mrb[16].mxu0 }
 0xb0f   : > { %v1399_v30 = vadd.f32 %v1398_v29, %v1318_v28  ;;  %v1400_v31 = vpop.f32.mrb[17].mxu0 }
 0xb10   : > { %v1401_v32 = vadd.f32 %v1400_v31, %v1318_v28 }
 0xb11   : > { %v1405_v33 = vmul.f32 0.5, %v1399_v30 }
 0xb12   : > { %v1406_v36 = vmul.f32 0.5, %v1401_v32  ;;  %v2034_v32 = vld [vmem:[%s2733_s5 + $0x50] sm:$0xff] }
 0xb13   : > { %2212 = vtanh.f32 %v1405_v33  ;;  %v2035_v33 = vld [vmem:[%s2733_s5 + $0x58] sm:$0xff] }
 0xb14   : > { %2214 = vtanh.f32 %v1406_v36 }
 0xb15   : > { %2216 = vtanh.f32 %v1393_v37 }
 0xb16   : > { %2218 = vtanh.f32 %v1395_v38 }
 0xb1d   : > { %v2213_v39 = vpop.eup %2212 }
 0xb1e   : > { %v2215_v40 = vpop.eup %2214  ;;  %v1409_v41 = vmul.f32 0.5, %v2213_v39 }
 0xb1f   : > { %v1410_v42 = vmul.f32 0.5, %v2215_v40  ;;  %v2217_v44 = vpop.eup %2216 }
 0xb20   : > { %v1411_v43 = vadd.f32 0.5, %v1409_v41  ;;  %v2219_v46 = vpop.eup %2218 }
 0xb21   : > { %v1412_v45 = vadd.f32 0.5, %v1410_v42 }
 0xb22   : > { %v1413_v47 = vmul.f32 %v2217_v44, %v1411_v43 }
 0xb23   : > { %v1414_v48 = vmul.f32 %v2219_v46, %v1412_v45 }
 0xb25   : > { %1437 = vmatprep.subr.mxu1 %v1414_v48 }
 0xb26   : > { %1438 = vmatpush1.msra.mxu1 %v1413_v47 }
 0xb27   : > { %2026 = vmatmul.mubr.msk.f32.vlgmr.msra.gmra.mrb[12].mxu1 %vm557_vm2, %v2022_v49 }
 0xb28   : > { %1507 = vmatprep.mubr.f32.mxu1 %v2293_v14 }
 0xb2b   : > { %2027 = vmatmul.mubr.msk.f32.gmra.mrb[0].mxu1 %vm557_vm2, %v2023_v35 }
 0xb2c   : > { %1718 = vmatprep.mubr.f32.mxu1 %v2293_v14 }
 0xbfa   : > { %v1503_v51 = vpop.f32.mrb[12].mxu1 }
 0xbfb   : > { %v1504_v52 = vadd.f32 %v1503_v51, %v1424_v50  ;;  %v1505_v53 = vpop.f32.mrb[13].mxu1 }
 0xbfc   : > { %v1506_v54 = vadd.f32 %v1505_v53, %v1424_v50  ;;  %v1738_v53 = vld [vmem:[%s2736_s8] sm:$0xff] }
 0xbfd   : > { %v1513_v55 = vadd.f32 %v1504_v52, %v1295_v11  ;;  %v1536_v11 = vpop.permute.xlu1 %1535 }
 0xbfe   : > { %v1514_v56 = vadd.f32 %v1506_v54, %v1296_v12 }
 0xc00   : > { %v2175_v57 = vpack.i.bf16 %v1514_v56, %v1513_v55 }
 0xc01   : > { %v555_v34 = vpop.permute.xlu1 %554 }
 0xc02   : > { %2176 = vrot.lane.b32.xlu0 %v2175_v57, %s2296_s25  ;;  %s391_s25 = scalar_lea.vmem [#allocation2], %s1974_s29  ;;  %s2232_s29 = sshll.u32 %s2298_s20, 4  ;;  %s2233_s29 = int_to_ptr.vmem [resolvable:$false] %s2232_s29 }
 0xc03   : > { %s1923_s15 = sshll.u32 %s391_s25, 4  ;;  %s2234_s1 = scalar_lea.vmem %s2233_s29, 256  ;;  %s2688_s15 = int_to_ptr.vmem [resolvable:$true] %s1923_s15 }
 0xc04   : > { %s2228_s19 = scalar_lea.vmem %s2688_s15, 128  ;;  %p2235_p13 = scmp.lt.s32.totalorder %s2688_s15, %s2233_s29 }
 0xc05   : > { %v993_v38 = vpop.permute.xlu1 %992  ;;  %p2229_p10 = scmp.ne.s32.totalorder %s2688_s15, %s2228_s19  ;;  %p2236_p0 = scmp.lt.s32.totalorder %s2234_s1, %s2228_s19 }
 0xc06   : > { %1530 = vperm.xlu0 %2148, %v2030_v58  }
 0xc07   : > { %p2230_p11 = pnand %p2229_p10, %p2399_p5  ;;  %p2237_p1 = por %p2236_p0, %p2235_p13 }
 0xc09   : > { %v1429_v42 = vpop.permute.xlu1 %1428  ;;  %p2231_p12 = pneg %p2230_p11 }
 0xc0a   : > { %773 = vperm.xlu0 %2148, %v1989_v59  }
 0xc0b   : > { %p2238_p2 = pnand %p2237_p1, %p2231_p12 }
 0xc0d   : > { %v1734_v51 = vpop.permute.xlu1 %1733 }
 0xc0e   : > { %1210 = vperm.xlu0 %2148, %v2013_v60  }
 0xc11   : > { %v1824_v59 = vpop.permute.xlu1 %1823 }
 0xc12   : > { %1645 = vperm.xlu0 %2148, %v2037_v61   ;;  %v1828_v61 = vld [vmem:[%s2738_s10] sm:$0xff] }
 0xc16   : > { %1742 = vperm.xlu0 %2148, %v1739_v62  }
 0xc1a   : > { %1832 = vperm.xlu0 %2148, %v1829_v63  }
 0xc74   : > { %v2177_v0 = vpop.permute.xlu0 %2176 }
 0xc75   : > { %v2179_v1 = vunpack.i.h.bf16 %v2177_v0  ;;  %v2178_v2 = vunpack.i.l.bf16 %v2177_v0 }
 0xc77   : > { %v1521_v3 = vsel %vm865_vm4, %v2179_v1, %v2178_v2  ;;  %v1520_v4 = vsel %vm865_vm4, %v2178_v2, %v2179_v1 }
 0xc78   : > { %v2083_v5 = vpack.c.bf16 %v1513_v55, %v1521_v3  ;;  %v2081_v6 = vpack.c.bf16 %v1514_v56, %v1520_v4 }
 0xc7a   : > { %2082 = vmatprep.subr.bf16.mxu0 %v2081_v6 }
 0xc7b   : > { %2084 = vmatpush1.bf16.msra.mxu0 %v2083_v5 }
 0xc7c   : > { %2051 = vmatprep.subr.mxu0 %v2293_v14 }
 0xc7e   : > { %2032 = vmatmul.mubr.msk.f32.vlgmr.msra.gmra.mrb[18].mxu0 %vm447_vm1, %v2028_v7 }
 0xc7f   : > { %1614 = vmatprep.mubr.f32.mxu0 %v2293_v14 }
 0xc82   : > { %2033 = vmatmul.mubr.msk.f32.gmra.mrb[20].mxu0 %vm447_vm1, %v2029_v8 }
 0xc83   : > { %2053 = vmatprep.mubr.msk.f32.mxu0 %vm2297_vm5, %v2293_v14 }
 0xc85   : > { %v1531_v20 = vpop.permute.xlu0 %1530 }
 0xc89   : > { %v774_v36 = vpop.permute.xlu0 %773 }
 0xc8a   : > { %v2087_v37 = vadd.f32 %v774_v36, %v555_v34 }
 0xc8c   : > { %v2088_v39 = vadd.f32 %v2087_v37, %v993_v38 }
 0xc8d   : > { %v1211_v40 = vpop.permute.xlu0 %1210 }
 0xc8e   : > { %v2089_v41 = vadd.f32 %v2088_v39, %v1211_v40 }
 0xc90   : > { %v2090_v43 = vadd.f32 %v2089_v41, %v1429_v42 }
 0xc91   : > { %v1646_v45 = vpop.permute.xlu0 %1645 }
 0xc92   : > { %v2091_v47 = vadd.f32 %v2090_v43, %v1646_v45 }
 0xc95   : > { %v1743_v55 = vpop.permute.xlu0 %1742 }
 0xd51   : > { %v1610_v9 = vpop.f32.mrb[18].mxu0 }
 0xd52   : > { %v1612_v10 = vpop.f32.mrb[19].mxu0  ;;  %v1611_v17 = vadd.f32 %v1610_v9, %v1531_v20 }
 0xd53   : > { %v1613_v21 = vadd.f32 %v1612_v10, %v1531_v20 }
 0xd55   : > { %v1616_v12 = vpop.f32.mrb[20].mxu0 }
 0xd56   : > { %v1617_v13 = vadd.f32 %v1616_v12, %v1536_v11  ;;  %v1618_v15 = vpop.f32.mrb[21].mxu0 }
 0xd57   : > { %v1619_v18 = vadd.f32 %v1618_v15, %v1536_v11 }
 0xd58   : > { %v1623_v19 = vmul.f32 0.5, %v1617_v13 }
 0xd59   : > { %v1624_v16 = vmul.f32 0.5, %v1619_v18 }
 0xd5a   : > { %2220 = vtanh.f32 %v1623_v19 }
 0xd5b   : > { %2222 = vtanh.f32 %v1624_v16 }
 0xd5c   : > { %2224 = vtanh.f32 %v1611_v17 }
 0xd5d   : > { %2226 = vtanh.f32 %v1613_v21 }
 0xd64   : > { %v2221_v22 = vpop.eup %2220 }
 0xd65   : > { %v2223_v23 = vpop.eup %2222  ;;  %v1627_v24 = vmul.f32 0.5, %v2221_v22 }
 0xd66   : > { %v1628_v25 = vmul.f32 0.5, %v2223_v23  ;;  %v2225_v27 = vpop.eup %2224 }
 0xd67   : > { %v1629_v26 = vadd.f32 0.5, %v1627_v24  ;;  %v2227_v29 = vpop.eup %2226 }
 0xd68   : > { %v1630_v28 = vadd.f32 0.5, %v1628_v25 }
 0xd69   : > { %v1631_v30 = vmul.f32 %v2225_v27, %v1629_v26 }
 0xd6a   : > { %v1632_v31 = vmul.f32 %v2227_v29, %v1630_v28 }
 0xd6c   : > { %1654 = vmatprep.subr.mxu1 %v1632_v31 }
 0xd6d   : > { %1655 = vmatpush1.msra.mxu1 %v1631_v30 }
 0xd6e   : > { %2038 = vmatmul.mubr.msk.f32.vlgmr.msra.gmra.mrb[14].mxu1 %vm557_vm2, %v2034_v32 }
 0xd6f   : > { %1722 = vmatprep.mubr.f32.mxu1 %v2293_v14 }
 0xd72   : > { %2039 = vmatmul.mubr.msk.f32.gmra.mrb[0].mxu1 %vm557_vm2, %v2035_v33 }
 0xe41   : > { %v1720_v44 = vpop.f32.mrb[14].mxu1 }
 0xe42   : > { %v1721_v46 = vpop.f32.mrb[15].mxu1 }
 0xe45   : > { %v1724_v48 = vpop.f32.mrb[0].mxu1 }
 0xe46   : > { %v1725_v49 = vpop.f32.mrb[1].mxu1 }
 0xe47   : > { %v2092_v50 = vadd.f32 %v2091_v47, %v1725_v49 }
 0xe49   : > { %vm1730_vm6 = vcmp.ge.f32.partialorder %v2092_v50, 0.0  ;;  %v1736_v52 = vmul.f32 %v2092_v50, %v1734_v51 }
 0xe4b   : > { %v1737_v54 = vsel %vm1730_vm6, %v2092_v50, %v1736_v52 }
 0xe4c   : > { %2052 = vmatpush3.msra.mxu0 %v1737_v54 }
 0xe4d   : > { %2054 = vmatmul.mubr.msk.f32.vlgmr.msra.gmra.mrb[22].mxu0 %vm557_vm2, %v1738_v53  ;;  %2056 = vmatprep.subr.mxu0 %v2293_v14 }
 0xe4e   : > { %2058 = vmatprep.mubr.msk.f32.mxu0 %vm2297_vm5, %v2293_v14  ;;  %v1833_v14 = vpop.permute.xlu0 %1832 }
 0xf20   : > { %v1814_v56 = vpop.f32.mrb[22].mxu0 }
 0xf21   : > { %v1815_v57 = vadd.f32 %v1814_v56, %v1743_v55  ;;  %v2055_v58 = vpop.f32.mrb[23].mxu0 }
 0xf23   : > { %vm1820_vm7 = vcmp.ge.f32.partialorder %v1815_v57, 0.0  ;;  %v1826_v60 = vmul.f32 %v1824_v59, %v1815_v57 }
 0xf25   : > { %v1827_v62 = vsel %vm1820_vm7, %v1815_v57, %v1826_v60 }
 0xf26   : > { %2057 = vmatpush3.msra.mxu0 %v1827_v62 }
 0xf27   : > { %2059 = vmatmul.mubr.msk.f32.vlgmr.msra.gmra.mrb[24].mxu0 %vm557_vm2, %v1828_v61 }
 0xffa   : > { %v1904_v63 = vpop.f32.mrb[24].mxu0 }
 0xffb   : > { %v1905_v0 = vadd.f32 %v1904_v63, %v1833_v14  ;;  %v2060_v1 = vpop.f32.mrb[25].mxu0 }
 0xffd   : > { %1908 = vst [vmem:[%s391_s25] sm:$0xff] %v1905_v0 }
 0xffe   : > { %2241 = shalt.err (!%p2238_p2)
}
 0xfff   : > { %s2242_s26 = scalar_lea.hbm %s2686_s17, 128  ;;  %s2246_s16 = scalar_lea.hbm %s2740_s12, 512 }
0x1000   : > { %p2243_p3 = scmp.ne.s32.totalorder %s2686_s17, %s2242_s26  ;;  %p2247_p8 = scmp.lt.u32.totalorder %s2686_s17, %s2740_s12 }
0x1001   : > { %p2248_p9 = scmp.lt.u32.totalorder %s2246_s16, %s2242_s26  ;;  %p2250_p11 = scmp.lt.u32.totalorder %s2242_s26, %s2686_s17 }
0x1002   : > { %p2244_p4 = pnand %p2243_p3, %p2399_p5 }
0x1003   : > { %p2249_p10 = por %p2248_p9, %p2247_p8 }
0x1004   : > { %p2245_p7 = pneg %p2244_p4 }
0x1005   : > { %p2251_p12 = por %p2250_p11, %p2249_p10 }
0x1007   : > { %p2252_p13 = pnand %p2251_p12, %p2245_p7 }
0x1009   : > { %2255 = shalt.err (!%p2252_p13)
}
0x100a   : > { %2103 = dma.vmem_to_hbm [thread:$0]  (%p2399_p5), %s2688_s15, 128, %s2686_s17, %s1910_s18  }
0x100b PF: > { %p2109_p0 = scmp.ge.s32.totalorder %s2290_s24, 2  ;;  %s1935_s1 = sand.u32 1, %s2278_s21  }
0x100c   : > { %s1936_s19 = scalar_lea.sflag [#allocation3], %s1935_s1 }
0x100d   : > { %p2106_p1 = pnand %p2109_p0, %p2403_p6 }
0x100f   : > { %2273 = dma.done.wait (!%p2106_p1), %s1936_s19, 128  }
0x1010   : > { %2275 = vsyncadd (!%p2106_p1), %s1936_s19, 4294967168  ;;  %p22_p2 = scmp.ge.s32.totalorder %s2387_s27, 6   ;;  %s2749_s21 = smov %s2282_s22 }
0x1011   : > { %s2750_s22 = smov %s2286_s23  ;;  %s2751_s23 = smov %s2397_s30 }
0x1012   : > { %s2752_s24 = smov %s2387_s27  ;;  %24 = sbr.rel (!%p22_p2) target bundleno = 6 (0x6), region = 122 }
0x1019   :  { %1941 = vsyncpa [#allocation3], 1 }
0x101a   :  { %1943 = vsyncpa [#allocation3 + $0x1], 1 }

</bundles_post_ra>
